<compile_context>
chip_gen: v5e
topology: v5e:2x2
jax: 0.10.0
libtpu: 0.0.40
codegen_flags: <defaults>
</compile_context>

<pallas_src>
import jax
import jax.numpy as jnp
from jax.experimental import pallas as pl
from jax.experimental.pallas import tpu as pltpu

# approxRELU coefficients: 0.117071*x^2 + 0.5*x + 0.375373
A2, A1, A0 = 0.117071, 0.5, 0.375373
BN_EPS = 1e-5

# Geometry for width_multiplier = 1 and 32x32 input (implied by linear1's 1024).
CIN = 3
H1 = W1 = 32   # conv1 output spatial
C1 = 4         # conv1 output channels -> W1*C1 = 128 packed lanes
H2 = W2 = 8    # conv3 output spatial
C2 = 16        # conv3 output channels -> W2*C2 = 128 packed lanes


# ----------------------------------------------------------------------------
# The single fused kernel (one image per grid step)
# ----------------------------------------------------------------------------
def _shallow_fused_kernel(x_ref, b1_ref, t1_ref, pw1_ref, ph1_ref,
                          s3_ref, b3_ref, t3_ref, pw2_ref, ph2_ref,
                          lw_ref, lb_ref, o_ref):
    # x_ref : (1, 36, 96)    height-padded input, lanes packed as w*3 + cin
    # b1_ref: (5, 96, 128)   banded conv1 weights (BN1 scale folded in)
    # t1_ref: (1, 128)       conv1 bias + BN1 shift, tiled to packed lanes
    # pw1/ph1: (128,128)/(32,32)  separable 3x3 avg-pool, stage 1 (1/9 in pw1)
    # s3_ref: (7, 8, 32)     stride-4 row selection (+ height pad) for conv3
    # b3_ref: (7, 128, 128)  banded conv3 weights (BN3 scale folded in)
    # t3_ref: (1, 128)
    # pw2/ph2: (128,128)/(8,8)    separable 3x3 avg-pool, stage 2 (1/9 in pw2)
    # lw_ref: (8, 128, 10)   linear weight, rows permuted to the packed layout
    # lb_ref: (1, 10)
    # o_ref : (1, 1, 10)
    x = x_ref[0]                                              # (36, 96)

    # ---- conv1 (k5 s1 p2) + BN1 -> packed (h, w*4+c) = (32, 128) ----
    acc = jnp.zeros((32, 128), jnp.float32)
    for kh in range(5):
        acc = acc + jnp.dot(x[kh:kh + 32, :], b1_ref[kh],
                            preferred_element_type=jnp.float32)
    y = acc + t1_ref[...]
    y = A2 * y * y + A1 * y + A0                              # approxRELU
    # 3x3/s1/p1 avg-pool, divisor 9 (separable: width pass then height pass)
    y = jnp.dot(ph1_ref[...],
                jnp.dot(y, pw1_ref[...], preferred_element_type=jnp.float32),
                preferred_element_type=jnp.float32)           # (32, 128)

    # ---- conv3 (k7 s4 p3) + BN3 -> packed (ho, wo*16+c) = (8, 128) ----
    acc2 = jnp.zeros((8, 128), jnp.float32)
    for kh in range(7):
        rows = jnp.dot(s3_ref[kh], y,                         # (8, 128)
                       preferred_element_type=jnp.float32)
        acc2 = acc2 + jnp.dot(rows, b3_ref[kh],
                              preferred_element_type=jnp.float32)
    y2 = acc2 + t3_ref[...]
    y2 = A2 * y2 * y2 + A1 * y2 + A0                          # approxRELU
    y2 = jnp.dot(ph2_ref[...],
                 jnp.dot(y2, pw2_ref[...], preferred_element_type=jnp.float32),
                 preferred_element_type=jnp.float32)          # (8, 128)

    # ---- flatten (NCHW order folded into the pre-permuted weight) + linear ----
    out = lb_ref[...]                                         # (1, 10)
    for h in range(8):
        out = out + jnp.dot(y2[h:h + 1, :], lw_ref[h],
                            preferred_element_type=jnp.float32)
    o_ref[0] = out


# ----------------------------------------------------------------------------
# Host-side parameter folding (input independent, tiny)
# ----------------------------------------------------------------------------
def _fold_bn(conv_bias, gamma, beta, mean, var):
    scale = gamma / jnp.sqrt(var + BN_EPS)
    shift = beta + (conv_bias - mean) * scale
    return scale, shift


def _banded_conv_weight(w_oihw, scale, w_in, w_out, stride, pad):
    """PyTorch conv weight (cout, cin, kh, kw) -> (kh, w_in*cin, w_out*cout).

    B[kh, wi*cin+ci, wo*cout+co] = scale[co] * w[co, ci, kh, wi - stride*wo + pad]
    (zero outside the kw tap range => width zero-padding handled implicitly).
    """
    w = jnp.transpose(w_oihw, (2, 3, 1, 0))                   # (kh, kw, cin, cout)
    w = w * scale[None, None, None, :]
    ksz = w.shape[1]
    wi = jnp.arange(w_in)[:, None]
    wo = jnp.arange(w_out)[None, :]
    kw = wi - stride * wo + pad                                # (w_in, w_out)
    valid = (kw >= 0) & (kw < ksz)
    b = w[:, jnp.clip(kw, 0, ksz - 1)]                         # (kh, w_in, w_out, cin, cout)
    b = jnp.where(valid[None, :, :, None, None], b, 0.0)
    b = jnp.transpose(b, (0, 1, 3, 2, 4))                      # (kh, w_in, cin, w_out, cout)
    return b.reshape(w.shape[0], w_in * w.shape[2], w_out * w.shape[3])


def _wpool_matrix(w, c):
    """Width pass of 3x3/s1/p1 avg-pool (divisor 9 folded in) on packed lanes."""
    lane = jnp.arange(w * c)
    wl, cl = lane // c, lane % c
    m = (cl[:, None] == cl[None, :]) & (jnp.abs(wl[:, None] - wl[None, :]) <= 1)
    return m.astype(jnp.float32) * (1.0 / 9.0)


def _hpool_matrix(h):
    """Height pass of 3x3/s1/p1 avg-pool (0/1 banded matrix)."""
    i = jnp.arange(h)
    return (jnp.abs(i[:, None] - i[None, :]) <= 1).astype(jnp.float32)


def _row_select_matrices(ksz, h_out, h_in, stride, pad):
    """S[kh, j, r] = (r == stride*j + kh - pad): stride-4 row gather + H pad."""
    kh = jnp.arange(ksz)[:, None, None]
    j = jnp.arange(h_out)[None, :, None]
    r = jnp.arange(h_in)[None, None, :]
    return (r == stride * j + kh - pad).astype(jnp.float32)


def _permute_linear_weight(lin_w, c, h, w):
    """Torch linear weight (10, c*h*w) with NCHW flatten order -> (h, w*c, 10)
    rows permuted to the kernel's packed (h, w*c + c_idx) layout."""
    f = (jnp.arange(c)[None, None, :] * (h * w)
         + jnp.arange(h)[:, None, None] * w
         + jnp.arange(w)[None, :, None])                       # (h, w, c) torch feature idx
    wt = jnp.transpose(lin_w)                                  # (c*h*w, 10)
    return wt[f.reshape(-1)].reshape(h, w * c, lin_w.shape[0])


# ----------------------------------------------------------------------------
# Forward pass
# ----------------------------------------------------------------------------
def shallow_forward(x_nchw, params):
    n = x_nchw.shape[0]

    # ---- parameter folding (weights only; in real inference do this once) ----
    s1, t1 = _fold_bn(params["conv1_b"], *params["bn1"])
    s3, t3 = _fold_bn(params["conv3_b"], *params["bn3"])
    b1 = _banded_conv_weight(params["conv1_w"], s1, 32, W1, 1, 2)    # (5, 96, 128)
    b3 = _banded_conv_weight(params["conv3_w"], s3, 32, W2, 4, 3)    # (7, 128, 128)
    t1p = jnp.tile(t1, W1).reshape(1, W1 * C1)                       # (1, 128)
    t3p = jnp.tile(t3, W2).reshape(1, W2 * C2)                       # (1, 128)
    pw1 = _wpool_matrix(W1, C1)                                      # (128, 128)
    ph1 = _hpool_matrix(H1)                                          # (32, 32)
    pw2 = _wpool_matrix(W2, C2)                                      # (128, 128)
    ph2 = _hpool_matrix(H2)                                          # (8, 8)
    s3m = _row_select_matrices(7, H2, H1, 4, 3)                      # (7, 8, 32)
    lw = _permute_linear_weight(params["lin_w"], C2, H2, W2)         # (8, 128, 10)
    lb = params["lin_b"].reshape(1, 10)

    # ---- input prologue: NCHW -> NHWC, height-pad by 2, pack W*Cin lanes ----
    x = jnp.transpose(x_nchw, (0, 2, 3, 1)).astype(jnp.float32)      # (N, 32, 32, 3)
    xp = jnp.pad(x, ((0, 0), (2, 2), (0, 0), (0, 0))).reshape(n, 36, 32 * CIN)

    # ---- single fused Pallas kernel ----
    out = pl.pallas_call(
        _shallow_fused_kernel,
        out_shape=jax.ShapeDtypeStruct((n, 1, 10), jnp.float32),
        grid=(n,),
        in_specs=[
            pl.BlockSpec((1, 36, 96), lambda b: (b, 0, 0)),      # input image
            pl.BlockSpec((5, 96, 128), lambda b: (0, 0, 0)),     # banded conv1
            pl.BlockSpec((1, 128), lambda b: (0, 0)),            # shift1
            pl.BlockSpec((128, 128), lambda b: (0, 0)),          # pool1 (W)
            pl.BlockSpec((32, 32), lambda b: (0, 0)),            # pool1 (H)
            pl.BlockSpec((7, 8, 32), lambda b: (0, 0, 0)),       # conv3 row sel
            pl.BlockSpec((7, 128, 128), lambda b: (0, 0, 0)),    # banded conv3
            pl.BlockSpec((1, 128), lambda b: (0, 0)),            # shift3
            pl.BlockSpec((128, 128), lambda b: (0, 0)),          # pool2 (W)
            pl.BlockSpec((8, 8), lambda b: (0, 0)),              # pool2 (H)
            pl.BlockSpec((8, 128, 10), lambda b: (0, 0, 0)),     # linear W
            pl.BlockSpec((1, 10), lambda b: (0, 0)),             # linear b
        ],
        out_specs=pl.BlockSpec((1, 1, 10), lambda b: (b, 0, 0)),
        compiler_params=pltpu.CompilerParams(
            dimension_semantics=("parallel",)),
    )(xp, b1, t1p, pw1, ph1, s3m, b3, t3p, pw2, ph2, lw, lb)
    return out.reshape(n, 10)


# ----------------------------------------------------------------------------
# Plain-JAX reference (independent formulation) for a correctness self-check
# ----------------------------------------------------------------------------
def _reference_forward(x_nchw, params):
    def bn(x, p):
        g, b, m, v = p
        return ((x - m[None, :, None, None])
                / jnp.sqrt(v + BN_EPS)[None, :, None, None]
                * g[None, :, None, None] + b[None, :, None, None])

    def act(x):
        return A2 * x * x + A1 * x + A0

    def avgpool(x):
        s = jax.lax.reduce_window(x, 0.0, jax.lax.add, (1, 1, 3, 3),
                                  (1, 1, 1, 1),
                                  [(0, 0), (0, 0), (1, 1), (1, 1)])
        return s / 9.0

    y = jax.lax.conv_general_dilated(
        x_nchw, params["conv1_w"], (1, 1), ((2, 2), (2, 2)),
        dimension_numbers=("NCHW", "OIHW", "NCHW"))
    y = y + params["conv1_b"][None, :, None, None]
    y = avgpool(act(bn(y, params["bn1"])))
    y = jax.lax.conv_general_dilated(
        y, params["conv3_w"], (4, 4), ((3, 3), (3, 3)),
        dimension_numbers=("NCHW", "OIHW", "NCHW"))
    y = y + params["conv3_b"][None, :, None, None]
    y = avgpool(act(bn(y, params["bn3"])))
    feat = y.reshape(y.shape[0], -1)
    return feat @ jnp.transpose(params["lin_w"]) + params["lin_b"]


# ----------------------------------------------------------------------------
# Deterministic synthetic parameters in native PyTorch layouts
# ----------------------------------------------------------------------------
def init_params(key, width_multiplier=1):
    wm = width_multiplier  # kernel packing assumes wm == 1
    c1, c2 = 4 * wm, 16 * wm
    ks = jax.random.split(key, 14)
    return {
        "conv1_w": 0.1 * jax.random.normal(ks[0], (c1, 3, 5, 5), jnp.float32),
        "conv1_b": 0.1 * jax.random.normal(ks[1], (c1,), jnp.float32),
        "bn1": (
            1.0 + 0.1 * jax.random.normal(ks[2], (c1,), jnp.float32),      # gamma
            0.1 * jax.random.normal(ks[3], (c1,), jnp.float32),             # beta
            0.1 * jax.random.normal(ks[4], (c1,), jnp.float32),             # mean
            1.0 + 0.1 * jnp.abs(jax.random.normal(ks[5], (c1,), jnp.float32)),  # var
        ),
        "conv3_w": 0.05 * jax.random.normal(ks[6], (c2, c1, 7, 7), jnp.float32),
        "conv3_b": 0.1 * jax.random.normal(ks[7], (c2,), jnp.float32),
        "bn3": (
            1.0 + 0.1 * jax.random.normal(ks[8], (c2,), jnp.float32),
            0.1 * jax.random.normal(ks[9], (c2,), jnp.float32),
            0.1 * jax.random.normal(ks[10], (c2,), jnp.float32),
            1.0 + 0.1 * jnp.abs(jax.random.normal(ks[11], (c2,), jnp.float32)),
        ),
        "lin_w": 0.05 * jax.random.normal(ks[12], (10, 1024 * wm), jnp.float32),
        "lin_b": 0.05 * jax.random.normal(ks[13], (10,), jnp.float32),
    }


if __name__ == "__main__":
    key = jax.random.PRNGKey(0)
    kp, kx = jax.random.split(key)
    params = init_params(kp, width_multiplier=1)
    # linear1 expects 1024 = 16 * 8 * 8 features -> 32x32 input (CIFAR-like)
    x = jax.random.normal(kx, (2, 3, 32, 32), jnp.float32)

    fwd = jax.jit(shallow_forward)
    out = jax.block_until_ready(fwd(x, params))
    assert out.shape == (2, 10), out.shape
    assert bool(jnp.all(jnp.isfinite(out)))

    ref = jax.block_until_ready(jax.jit(_reference_forward)(x, params))
    err = float(jnp.max(jnp.abs(out - ref)))
    assert err < 5e-2, f"max |pallas - reference| = {err}"

    print("KERNEL_OK")
</pallas_src>

<mosaic_0001>
module attributes {stable_mosaic.version = 11 : i64} {
  func.func @_shallow_fused_kernel(%arg0: i32, %arg1: memref<1x36x96xf32, #tpu.memory_space<vmem>>, %arg2: memref<5x96x128xf32, #tpu.memory_space<vmem>>, %arg3: memref<1x128xf32, #tpu.memory_space<vmem>>, %arg4: memref<128x128xf32, #tpu.memory_space<vmem>>, %arg5: memref<32x32xf32, #tpu.memory_space<vmem>>, %arg6: memref<7x8x32xf32, #tpu.memory_space<vmem>>, %arg7: memref<7x128x128xf32, #tpu.memory_space<vmem>>, %arg8: memref<1x128xf32, #tpu.memory_space<vmem>>, %arg9: memref<128x128xf32, #tpu.memory_space<vmem>>, %arg10: memref<8x8xf32, #tpu.memory_space<vmem>>, %arg11: memref<8x128x10xf32, #tpu.memory_space<vmem>>, %arg12: memref<1x10xf32, #tpu.memory_space<vmem>>, %arg13: memref<1x1x10xf32, #tpu.memory_space<vmem>>) attributes {dimension_semantics = [#tpu.dimension_semantics<parallel>], iteration_bounds = array<i64: 2>, scalar_prefetch = 0 : i64, scratch_operands = 0 : i64, tpu.core_type = #tpu.core_type<tc>, window_params = [{transform_indices = @transform_0, window_bounds = array<i64: 1, 36, 96>}, {pipeline_mode = #tpu.pipeline_mode<synchronous>, transform_indices = @transform_1, window_bounds = array<i64: 5, 96, 128>}, {pipeline_mode = #tpu.pipeline_mode<synchronous>, transform_indices = @transform_2, window_bounds = array<i64: 1, 128>}, {pipeline_mode = #tpu.pipeline_mode<synchronous>, transform_indices = @transform_3, window_bounds = array<i64: 128, 128>}, {pipeline_mode = #tpu.pipeline_mode<synchronous>, transform_indices = @transform_4, window_bounds = array<i64: 32, 32>}, {pipeline_mode = #tpu.pipeline_mode<synchronous>, transform_indices = @transform_5, window_bounds = array<i64: 7, 8, 32>}, {pipeline_mode = #tpu.pipeline_mode<synchronous>, transform_indices = @transform_6, window_bounds = array<i64: 7, 128, 128>}, {pipeline_mode = #tpu.pipeline_mode<synchronous>, transform_indices = @transform_7, window_bounds = array<i64: 1, 128>}, {pipeline_mode = #tpu.pipeline_mode<synchronous>, transform_indices = @transform_8, window_bounds = array<i64: 128, 128>}, {pipeline_mode = #tpu.pipeline_mode<synchronous>, transform_indices = @transform_9, window_bounds = array<i64: 8, 8>}, {pipeline_mode = #tpu.pipeline_mode<synchronous>, transform_indices = @transform_10, window_bounds = array<i64: 8, 128, 10>}, {pipeline_mode = #tpu.pipeline_mode<synchronous>, transform_indices = @transform_11, window_bounds = array<i64: 1, 10>}, {transform_indices = @transform_12, window_bounds = array<i64: 1, 1, 10>}]} {
    %c0 = arith.constant 0 : index
    %c0_0 = arith.constant 0 : index
    %c0_1 = arith.constant 0 : index
    %0 = vector.load %arg1[%c0, %c0_0, %c0_1] : memref<1x36x96xf32, #tpu.memory_space<vmem>>, vector<1x36x96xf32>
    %1 = vector.shape_cast %0 : vector<1x36x96xf32> to vector<36x96xf32>
    %cst = arith.constant 0.000000e+00 : f32
    %2 = vector.broadcast %cst : f32 to vector<32x128xf32>
    %3 = vector.extract_strided_slice %1 {offsets = [0, 0], sizes = [32, 96], strides = [1, 1]} : vector<36x96xf32> to vector<32x96xf32>
    %c0_2 = arith.constant 0 : index
    %c0_3 = arith.constant 0 : index
    %c0_4 = arith.constant 0 : index
    %4 = vector.load %arg2[%c0_2, %c0_3, %c0_4] : memref<5x96x128xf32, #tpu.memory_space<vmem>>, vector<1x96x128xf32>
    %5 = vector.shape_cast %4 : vector<1x96x128xf32> to vector<96x128xf32>
    %cst_5 = arith.constant dense<0.000000e+00> : vector<32x128xf32>
    %6 = tpu.matmul %3, %5, %cst_5 {dimension_numbers = #tpu.dot_dimension_numbers<[1], [0], [0], [1], [0, 0, 1, 1], [], []>} : vector<32x96xf32>, vector<96x128xf32>, vector<32x128xf32> -> vector<32x128xf32>
    %7 = arith.addf %2, %6 : vector<32x128xf32>
    %8 = vector.extract_strided_slice %1 {offsets = [1, 0], sizes = [32, 96], strides = [1, 1]} : vector<36x96xf32> to vector<32x96xf32>
    %c1 = arith.constant 1 : index
    %c0_6 = arith.constant 0 : index
    %c0_7 = arith.constant 0 : index
    %9 = vector.load %arg2[%c1, %c0_6, %c0_7] : memref<5x96x128xf32, #tpu.memory_space<vmem>>, vector<1x96x128xf32>
    %10 = vector.shape_cast %9 : vector<1x96x128xf32> to vector<96x128xf32>
    %cst_8 = arith.constant dense<0.000000e+00> : vector<32x128xf32>
    %11 = tpu.matmul %8, %10, %cst_8 {dimension_numbers = #tpu.dot_dimension_numbers<[1], [0], [0], [1], [0, 0, 1, 1], [], []>} : vector<32x96xf32>, vector<96x128xf32>, vector<32x128xf32> -> vector<32x128xf32>
    %12 = arith.addf %7, %11 : vector<32x128xf32>
    %13 = vector.extract_strided_slice %1 {offsets = [2, 0], sizes = [32, 96], strides = [1, 1]} : vector<36x96xf32> to vector<32x96xf32>
    %c2 = arith.constant 2 : index
    %c0_9 = arith.constant 0 : index
    %c0_10 = arith.constant 0 : index
    %14 = vector.load %arg2[%c2, %c0_9, %c0_10] : memref<5x96x128xf32, #tpu.memory_space<vmem>>, vector<1x96x128xf32>
    %15 = vector.shape_cast %14 : vector<1x96x128xf32> to vector<96x128xf32>
    %cst_11 = arith.constant dense<0.000000e+00> : vector<32x128xf32>
    %16 = tpu.matmul %13, %15, %cst_11 {dimension_numbers = #tpu.dot_dimension_numbers<[1], [0], [0], [1], [0, 0, 1, 1], [], []>} : vector<32x96xf32>, vector<96x128xf32>, vector<32x128xf32> -> vector<32x128xf32>
    %17 = arith.addf %12, %16 : vector<32x128xf32>
    %18 = vector.extract_strided_slice %1 {offsets = [3, 0], sizes = [32, 96], strides = [1, 1]} : vector<36x96xf32> to vector<32x96xf32>
    %c3 = arith.constant 3 : index
    %c0_12 = arith.constant 0 : index
    %c0_13 = arith.constant 0 : index
    %19 = vector.load %arg2[%c3, %c0_12, %c0_13] : memref<5x96x128xf32, #tpu.memory_space<vmem>>, vector<1x96x128xf32>
    %20 = vector.shape_cast %19 : vector<1x96x128xf32> to vector<96x128xf32>
    %cst_14 = arith.constant dense<0.000000e+00> : vector<32x128xf32>
    %21 = tpu.matmul %18, %20, %cst_14 {dimension_numbers = #tpu.dot_dimension_numbers<[1], [0], [0], [1], [0, 0, 1, 1], [], []>} : vector<32x96xf32>, vector<96x128xf32>, vector<32x128xf32> -> vector<32x128xf32>
    %22 = arith.addf %17, %21 : vector<32x128xf32>
    %23 = vector.extract_strided_slice %1 {offsets = [4, 0], sizes = [32, 96], strides = [1, 1]} : vector<36x96xf32> to vector<32x96xf32>
    %c4 = arith.constant 4 : index
    %c0_15 = arith.constant 0 : index
    %c0_16 = arith.constant 0 : index
    %24 = vector.load %arg2[%c4, %c0_15, %c0_16] : memref<5x96x128xf32, #tpu.memory_space<vmem>>, vector<1x96x128xf32>
    %25 = vector.shape_cast %24 : vector<1x96x128xf32> to vector<96x128xf32>
    %cst_17 = arith.constant dense<0.000000e+00> : vector<32x128xf32>
    %26 = tpu.matmul %23, %25, %cst_17 {dimension_numbers = #tpu.dot_dimension_numbers<[1], [0], [0], [1], [0, 0, 1, 1], [], []>} : vector<32x96xf32>, vector<96x128xf32>, vector<32x128xf32> -> vector<32x128xf32>
    %27 = arith.addf %22, %26 : vector<32x128xf32>
    %c0_18 = arith.constant 0 : index
    %c0_19 = arith.constant 0 : index
    %28 = vector.load %arg3[%c0_18, %c0_19] : memref<1x128xf32, #tpu.memory_space<vmem>>, vector<1x128xf32>
    %29 = vector.broadcast %28 : vector<1x128xf32> to vector<32x128xf32>
    %30 = arith.addf %27, %29 : vector<32x128xf32>
    %cst_20 = arith.constant 1.170710e-01 : f32
    %31 = vector.broadcast %cst_20 : f32 to vector<32x128xf32>
    %32 = arith.mulf %31, %30 : vector<32x128xf32>
    %33 = arith.mulf %32, %30 : vector<32x128xf32>
    %cst_21 = arith.constant 5.000000e-01 : f32
    %34 = vector.broadcast %cst_21 : f32 to vector<32x128xf32>
    %35 = arith.mulf %34, %30 : vector<32x128xf32>
    %36 = arith.addf %33, %35 : vector<32x128xf32>
    %cst_22 = arith.constant 3.753730e-01 : f32
    %37 = vector.broadcast %cst_22 : f32 to vector<32x128xf32>
    %38 = arith.addf %36, %37 : vector<32x128xf32>
    %c0_23 = arith.constant 0 : index
    %c0_24 = arith.constant 0 : index
    %39 = vector.load %arg5[%c0_23, %c0_24] : memref<32x32xf32, #tpu.memory_space<vmem>>, vector<32x32xf32>
    %c0_25 = arith.constant 0 : index
    %c0_26 = arith.constant 0 : index
    %40 = vector.load %arg4[%c0_25, %c0_26] : memref<128x128xf32, #tpu.memory_space<vmem>>, vector<128x128xf32>
    %cst_27 = arith.constant dense<0.000000e+00> : vector<32x128xf32>
    %41 = tpu.matmul %38, %40, %cst_27 {dimension_numbers = #tpu.dot_dimension_numbers<[1], [0], [0], [1], [0, 0, 1, 1], [], []>} : vector<32x128xf32>, vector<128x128xf32>, vector<32x128xf32> -> vector<32x128xf32>
    %cst_28 = arith.constant dense<0.000000e+00> : vector<32x128xf32>
    %42 = tpu.matmul %39, %41, %cst_28 {dimension_numbers = #tpu.dot_dimension_numbers<[1], [0], [0], [1], [0, 0, 1, 1], [], []>} : vector<32x32xf32>, vector<32x128xf32>, vector<32x128xf32> -> vector<32x128xf32>
    %cst_29 = arith.constant 0.000000e+00 : f32
    %43 = vector.broadcast %cst_29 : f32 to vector<8x128xf32>
    %c0_30 = arith.constant 0 : index
    %c0_31 = arith.constant 0 : index
    %c0_32 = arith.constant 0 : index
    %44 = vector.load %arg6[%c0_30, %c0_31, %c0_32] : memref<7x8x32xf32, #tpu.memory_space<vmem>>, vector<1x8x32xf32>
    %45 = vector.shape_cast %44 : vector<1x8x32xf32> to vector<8x32xf32>
    %cst_33 = arith.constant dense<0.000000e+00> : vector<8x128xf32>
    %46 = tpu.matmul %45, %42, %cst_33 {dimension_numbers = #tpu.dot_dimension_numbers<[1], [0], [0], [1], [0, 0, 1, 1], [], []>} : vector<8x32xf32>, vector<32x128xf32>, vector<8x128xf32> -> vector<8x128xf32>
    %c0_34 = arith.constant 0 : index
    %c0_35 = arith.constant 0 : index
    %c0_36 = arith.constant 0 : index
    %47 = vector.load %arg7[%c0_34, %c0_35, %c0_36] : memref<7x128x128xf32, #tpu.memory_space<vmem>>, vector<1x128x128xf32>
    %48 = vector.shape_cast %47 : vector<1x128x128xf32> to vector<128x128xf32>
    %cst_37 = arith.constant dense<0.000000e+00> : vector<8x128xf32>
    %49 = tpu.matmul %46, %48, %cst_37 {dimension_numbers = #tpu.dot_dimension_numbers<[1], [0], [0], [1], [0, 0, 1, 1], [], []>} : vector<8x128xf32>, vector<128x128xf32>, vector<8x128xf32> -> vector<8x128xf32>
    %50 = arith.addf %43, %49 : vector<8x128xf32>
    %c1_38 = arith.constant 1 : index
    %c0_39 = arith.constant 0 : index
    %c0_40 = arith.constant 0 : index
    %51 = vector.load %arg6[%c1_38, %c0_39, %c0_40] : memref<7x8x32xf32, #tpu.memory_space<vmem>>, vector<1x8x32xf32>
    %52 = vector.shape_cast %51 : vector<1x8x32xf32> to vector<8x32xf32>
    %cst_41 = arith.constant dense<0.000000e+00> : vector<8x128xf32>
    %53 = tpu.matmul %52, %42, %cst_41 {dimension_numbers = #tpu.dot_dimension_numbers<[1], [0], [0], [1], [0, 0, 1, 1], [], []>} : vector<8x32xf32>, vector<32x128xf32>, vector<8x128xf32> -> vector<8x128xf32>
    %c1_42 = arith.constant 1 : index
    %c0_43 = arith.constant 0 : index
    %c0_44 = arith.constant 0 : index
    %54 = vector.load %arg7[%c1_42, %c0_43, %c0_44] : memref<7x128x128xf32, #tpu.memory_space<vmem>>, vector<1x128x128xf32>
    %55 = vector.shape_cast %54 : vector<1x128x128xf32> to vector<128x128xf32>
    %cst_45 = arith.constant dense<0.000000e+00> : vector<8x128xf32>
    %56 = tpu.matmul %53, %55, %cst_45 {dimension_numbers = #tpu.dot_dimension_numbers<[1], [0], [0], [1], [0, 0, 1, 1], [], []>} : vector<8x128xf32>, vector<128x128xf32>, vector<8x128xf32> -> vector<8x128xf32>
    %57 = arith.addf %50, %56 : vector<8x128xf32>
    %c2_46 = arith.constant 2 : index
    %c0_47 = arith.constant 0 : index
    %c0_48 = arith.constant 0 : index
    %58 = vector.load %arg6[%c2_46, %c0_47, %c0_48] : memref<7x8x32xf32, #tpu.memory_space<vmem>>, vector<1x8x32xf32>
    %59 = vector.shape_cast %58 : vector<1x8x32xf32> to vector<8x32xf32>
    %cst_49 = arith.constant dense<0.000000e+00> : vector<8x128xf32>
    %60 = tpu.matmul %59, %42, %cst_49 {dimension_numbers = #tpu.dot_dimension_numbers<[1], [0], [0], [1], [0, 0, 1, 1], [], []>} : vector<8x32xf32>, vector<32x128xf32>, vector<8x128xf32> -> vector<8x128xf32>
    %c2_50 = arith.constant 2 : index
    %c0_51 = arith.constant 0 : index
    %c0_52 = arith.constant 0 : index
    %61 = vector.load %arg7[%c2_50, %c0_51, %c0_52] : memref<7x128x128xf32, #tpu.memory_space<vmem>>, vector<1x128x128xf32>
    %62 = vector.shape_cast %61 : vector<1x128x128xf32> to vector<128x128xf32>
    %cst_53 = arith.constant dense<0.000000e+00> : vector<8x128xf32>
    %63 = tpu.matmul %60, %62, %cst_53 {dimension_numbers = #tpu.dot_dimension_numbers<[1], [0], [0], [1], [0, 0, 1, 1], [], []>} : vector<8x128xf32>, vector<128x128xf32>, vector<8x128xf32> -> vector<8x128xf32>
    %64 = arith.addf %57, %63 : vector<8x128xf32>
    %c3_54 = arith.constant 3 : index
    %c0_55 = arith.constant 0 : index
    %c0_56 = arith.constant 0 : index
    %65 = vector.load %arg6[%c3_54, %c0_55, %c0_56] : memref<7x8x32xf32, #tpu.memory_space<vmem>>, vector<1x8x32xf32>
    %66 = vector.shape_cast %65 : vector<1x8x32xf32> to vector<8x32xf32>
    %cst_57 = arith.constant dense<0.000000e+00> : vector<8x128xf32>
    %67 = tpu.matmul %66, %42, %cst_57 {dimension_numbers = #tpu.dot_dimension_numbers<[1], [0], [0], [1], [0, 0, 1, 1], [], []>} : vector<8x32xf32>, vector<32x128xf32>, vector<8x128xf32> -> vector<8x128xf32>
    %c3_58 = arith.constant 3 : index
    %c0_59 = arith.constant 0 : index
    %c0_60 = arith.constant 0 : index
    %68 = vector.load %arg7[%c3_58, %c0_59, %c0_60] : memref<7x128x128xf32, #tpu.memory_space<vmem>>, vector<1x128x128xf32>
    %69 = vector.shape_cast %68 : vector<1x128x128xf32> to vector<128x128xf32>
    %cst_61 = arith.constant dense<0.000000e+00> : vector<8x128xf32>
    %70 = tpu.matmul %67, %69, %cst_61 {dimension_numbers = #tpu.dot_dimension_numbers<[1], [0], [0], [1], [0, 0, 1, 1], [], []>} : vector<8x128xf32>, vector<128x128xf32>, vector<8x128xf32> -> vector<8x128xf32>
    %71 = arith.addf %64, %70 : vector<8x128xf32>
    %c4_62 = arith.constant 4 : index
    %c0_63 = arith.constant 0 : index
    %c0_64 = arith.constant 0 : index
    %72 = vector.load %arg6[%c4_62, %c0_63, %c0_64] : memref<7x8x32xf32, #tpu.memory_space<vmem>>, vector<1x8x32xf32>
    %73 = vector.shape_cast %72 : vector<1x8x32xf32> to vector<8x32xf32>
    %cst_65 = arith.constant dense<0.000000e+00> : vector<8x128xf32>
    %74 = tpu.matmul %73, %42, %cst_65 {dimension_numbers = #tpu.dot_dimension_numbers<[1], [0], [0], [1], [0, 0, 1, 1], [], []>} : vector<8x32xf32>, vector<32x128xf32>, vector<8x128xf32> -> vector<8x128xf32>
    %c4_66 = arith.constant 4 : index
    %c0_67 = arith.constant 0 : index
    %c0_68 = arith.constant 0 : index
    %75 = vector.load %arg7[%c4_66, %c0_67, %c0_68] : memref<7x128x128xf32, #tpu.memory_space<vmem>>, vector<1x128x128xf32>
    %76 = vector.shape_cast %75 : vector<1x128x128xf32> to vector<128x128xf32>
    %cst_69 = arith.constant dense<0.000000e+00> : vector<8x128xf32>
    %77 = tpu.matmul %74, %76, %cst_69 {dimension_numbers = #tpu.dot_dimension_numbers<[1], [0], [0], [1], [0, 0, 1, 1], [], []>} : vector<8x128xf32>, vector<128x128xf32>, vector<8x128xf32> -> vector<8x128xf32>
    %78 = arith.addf %71, %77 : vector<8x128xf32>
    %c5 = arith.constant 5 : index
    %c0_70 = arith.constant 0 : index
    %c0_71 = arith.constant 0 : index
    %79 = vector.load %arg6[%c5, %c0_70, %c0_71] : memref<7x8x32xf32, #tpu.memory_space<vmem>>, vector<1x8x32xf32>
    %80 = vector.shape_cast %79 : vector<1x8x32xf32> to vector<8x32xf32>
    %cst_72 = arith.constant dense<0.000000e+00> : vector<8x128xf32>
    %81 = tpu.matmul %80, %42, %cst_72 {dimension_numbers = #tpu.dot_dimension_numbers<[1], [0], [0], [1], [0, 0, 1, 1], [], []>} : vector<8x32xf32>, vector<32x128xf32>, vector<8x128xf32> -> vector<8x128xf32>
    %c5_73 = arith.constant 5 : index
    %c0_74 = arith.constant 0 : index
    %c0_75 = arith.constant 0 : index
    %82 = vector.load %arg7[%c5_73, %c0_74, %c0_75] : memref<7x128x128xf32, #tpu.memory_space<vmem>>, vector<1x128x128xf32>
    %83 = vector.shape_cast %82 : vector<1x128x128xf32> to vector<128x128xf32>
    %cst_76 = arith.constant dense<0.000000e+00> : vector<8x128xf32>
    %84 = tpu.matmul %81, %83, %cst_76 {dimension_numbers = #tpu.dot_dimension_numbers<[1], [0], [0], [1], [0, 0, 1, 1], [], []>} : vector<8x128xf32>, vector<128x128xf32>, vector<8x128xf32> -> vector<8x128xf32>
    %85 = arith.addf %78, %84 : vector<8x128xf32>
    %c6 = arith.constant 6 : index
    %c0_77 = arith.constant 0 : index
    %c0_78 = arith.constant 0 : index
    %86 = vector.load %arg6[%c6, %c0_77, %c0_78] : memref<7x8x32xf32, #tpu.memory_space<vmem>>, vector<1x8x32xf32>
    %87 = vector.shape_cast %86 : vector<1x8x32xf32> to vector<8x32xf32>
    %cst_79 = arith.constant dense<0.000000e+00> : vector<8x128xf32>
    %88 = tpu.matmul %87, %42, %cst_79 {dimension_numbers = #tpu.dot_dimension_numbers<[1], [0], [0], [1], [0, 0, 1, 1], [], []>} : vector<8x32xf32>, vector<32x128xf32>, vector<8x128xf32> -> vector<8x128xf32>
    %c6_80 = arith.constant 6 : index
    %c0_81 = arith.constant 0 : index
    %c0_82 = arith.constant 0 : index
    %89 = vector.load %arg7[%c6_80, %c0_81, %c0_82] : memref<7x128x128xf32, #tpu.memory_space<vmem>>, vector<1x128x128xf32>
    %90 = vector.shape_cast %89 : vector<1x128x128xf32> to vector<128x128xf32>
    %cst_83 = arith.constant dense<0.000000e+00> : vector<8x128xf32>
    %91 = tpu.matmul %88, %90, %cst_83 {dimension_numbers = #tpu.dot_dimension_numbers<[1], [0], [0], [1], [0, 0, 1, 1], [], []>} : vector<8x128xf32>, vector<128x128xf32>, vector<8x128xf32> -> vector<8x128xf32>
    %92 = arith.addf %85, %91 : vector<8x128xf32>
    %c0_84 = arith.constant 0 : index
    %c0_85 = arith.constant 0 : index
    %93 = vector.load %arg8[%c0_84, %c0_85] : memref<1x128xf32, #tpu.memory_space<vmem>>, vector<1x128xf32>
    %94 = vector.broadcast %93 : vector<1x128xf32> to vector<8x128xf32>
    %95 = arith.addf %92, %94 : vector<8x128xf32>
    %cst_86 = arith.constant 1.170710e-01 : f32
    %96 = vector.broadcast %cst_86 : f32 to vector<8x128xf32>
    %97 = arith.mulf %96, %95 : vector<8x128xf32>
    %98 = arith.mulf %97, %95 : vector<8x128xf32>
    %cst_87 = arith.constant 5.000000e-01 : f32
    %99 = vector.broadcast %cst_87 : f32 to vector<8x128xf32>
    %100 = arith.mulf %99, %95 : vector<8x128xf32>
    %101 = arith.addf %98, %100 : vector<8x128xf32>
    %cst_88 = arith.constant 3.753730e-01 : f32
    %102 = vector.broadcast %cst_88 : f32 to vector<8x128xf32>
    %103 = arith.addf %101, %102 : vector<8x128xf32>
    %c0_89 = arith.constant 0 : index
    %c0_90 = arith.constant 0 : index
    %104 = vector.load %arg10[%c0_89, %c0_90] : memref<8x8xf32, #tpu.memory_space<vmem>>, vector<8x8xf32>
    %c0_91 = arith.constant 0 : index
    %c0_92 = arith.constant 0 : index
    %105 = vector.load %arg9[%c0_91, %c0_92] : memref<128x128xf32, #tpu.memory_space<vmem>>, vector<128x128xf32>
    %cst_93 = arith.constant dense<0.000000e+00> : vector<8x128xf32>
    %106 = tpu.matmul %103, %105, %cst_93 {dimension_numbers = #tpu.dot_dimension_numbers<[1], [0], [0], [1], [0, 0, 1, 1], [], []>} : vector<8x128xf32>, vector<128x128xf32>, vector<8x128xf32> -> vector<8x128xf32>
    %cst_94 = arith.constant dense<0.000000e+00> : vector<8x128xf32>
    %107 = tpu.matmul %104, %106, %cst_94 {dimension_numbers = #tpu.dot_dimension_numbers<[1], [0], [0], [1], [0, 0, 1, 1], [], []>} : vector<8x8xf32>, vector<8x128xf32>, vector<8x128xf32> -> vector<8x128xf32>
    %c0_95 = arith.constant 0 : index
    %c0_96 = arith.constant 0 : index
    %108 = vector.load %arg12[%c0_95, %c0_96] : memref<1x10xf32, #tpu.memory_space<vmem>>, vector<1x10xf32>
    %109 = vector.extract_strided_slice %107 {offsets = [0, 0], sizes = [1, 128], strides = [1, 1]} : vector<8x128xf32> to vector<1x128xf32>
    %c0_97 = arith.constant 0 : index
    %c0_98 = arith.constant 0 : index
    %c0_99 = arith.constant 0 : index
    %110 = vector.load %arg11[%c0_97, %c0_98, %c0_99] : memref<8x128x10xf32, #tpu.memory_space<vmem>>, vector<1x128x10xf32>
    %111 = vector.shape_cast %110 : vector<1x128x10xf32> to vector<128x10xf32>
    %cst_100 = arith.constant dense<0.000000e+00> : vector<1x10xf32>
    %112 = tpu.matmul %109, %111, %cst_100 {dimension_numbers = #tpu.dot_dimension_numbers<[1], [0], [0], [1], [0, 0, 1, 1], [], []>} : vector<1x128xf32>, vector<128x10xf32>, vector<1x10xf32> -> vector<1x10xf32>
    %113 = arith.addf %108, %112 : vector<1x10xf32>
    %114 = vector.extract_strided_slice %107 {offsets = [1, 0], sizes = [1, 128], strides = [1, 1]} : vector<8x128xf32> to vector<1x128xf32>
    %c1_101 = arith.constant 1 : index
    %c0_102 = arith.constant 0 : index
    %c0_103 = arith.constant 0 : index
    %115 = vector.load %arg11[%c1_101, %c0_102, %c0_103] : memref<8x128x10xf32, #tpu.memory_space<vmem>>, vector<1x128x10xf32>
    %116 = vector.shape_cast %115 : vector<1x128x10xf32> to vector<128x10xf32>
    %cst_104 = arith.constant dense<0.000000e+00> : vector<1x10xf32>
    %117 = tpu.matmul %114, %116, %cst_104 {dimension_numbers = #tpu.dot_dimension_numbers<[1], [0], [0], [1], [0, 0, 1, 1], [], []>} : vector<1x128xf32>, vector<128x10xf32>, vector<1x10xf32> -> vector<1x10xf32>
    %118 = arith.addf %113, %117 : vector<1x10xf32>
    %119 = vector.extract_strided_slice %107 {offsets = [2, 0], sizes = [1, 128], strides = [1, 1]} : vector<8x128xf32> to vector<1x128xf32>
    %c2_105 = arith.constant 2 : index
    %c0_106 = arith.constant 0 : index
    %c0_107 = arith.constant 0 : index
    %120 = vector.load %arg11[%c2_105, %c0_106, %c0_107] : memref<8x128x10xf32, #tpu.memory_space<vmem>>, vector<1x128x10xf32>
    %121 = vector.shape_cast %120 : vector<1x128x10xf32> to vector<128x10xf32>
    %cst_108 = arith.constant dense<0.000000e+00> : vector<1x10xf32>
    %122 = tpu.matmul %119, %121, %cst_108 {dimension_numbers = #tpu.dot_dimension_numbers<[1], [0], [0], [1], [0, 0, 1, 1], [], []>} : vector<1x128xf32>, vector<128x10xf32>, vector<1x10xf32> -> vector<1x10xf32>
    %123 = arith.addf %118, %122 : vector<1x10xf32>
    %124 = vector.extract_strided_slice %107 {offsets = [3, 0], sizes = [1, 128], strides = [1, 1]} : vector<8x128xf32> to vector<1x128xf32>
    %c3_109 = arith.constant 3 : index
    %c0_110 = arith.constant 0 : index
    %c0_111 = arith.constant 0 : index
    %125 = vector.load %arg11[%c3_109, %c0_110, %c0_111] : memref<8x128x10xf32, #tpu.memory_space<vmem>>, vector<1x128x10xf32>
    %126 = vector.shape_cast %125 : vector<1x128x10xf32> to vector<128x10xf32>
    %cst_112 = arith.constant dense<0.000000e+00> : vector<1x10xf32>
    %127 = tpu.matmul %124, %126, %cst_112 {dimension_numbers = #tpu.dot_dimension_numbers<[1], [0], [0], [1], [0, 0, 1, 1], [], []>} : vector<1x128xf32>, vector<128x10xf32>, vector<1x10xf32> -> vector<1x10xf32>
    %128 = arith.addf %123, %127 : vector<1x10xf32>
    %129 = vector.extract_strided_slice %107 {offsets = [4, 0], sizes = [1, 128], strides = [1, 1]} : vector<8x128xf32> to vector<1x128xf32>
    %c4_113 = arith.constant 4 : index
    %c0_114 = arith.constant 0 : index
    %c0_115 = arith.constant 0 : index
    %130 = vector.load %arg11[%c4_113, %c0_114, %c0_115] : memref<8x128x10xf32, #tpu.memory_space<vmem>>, vector<1x128x10xf32>
    %131 = vector.shape_cast %130 : vector<1x128x10xf32> to vector<128x10xf32>
    %cst_116 = arith.constant dense<0.000000e+00> : vector<1x10xf32>
    %132 = tpu.matmul %129, %131, %cst_116 {dimension_numbers = #tpu.dot_dimension_numbers<[1], [0], [0], [1], [0, 0, 1, 1], [], []>} : vector<1x128xf32>, vector<128x10xf32>, vector<1x10xf32> -> vector<1x10xf32>
    %133 = arith.addf %128, %132 : vector<1x10xf32>
    %134 = vector.extract_strided_slice %107 {offsets = [5, 0], sizes = [1, 128], strides = [1, 1]} : vector<8x128xf32> to vector<1x128xf32>
    %c5_117 = arith.constant 5 : index
    %c0_118 = arith.constant 0 : index
    %c0_119 = arith.constant 0 : index
    %135 = vector.load %arg11[%c5_117, %c0_118, %c0_119] : memref<8x128x10xf32, #tpu.memory_space<vmem>>, vector<1x128x10xf32>
    %136 = vector.shape_cast %135 : vector<1x128x10xf32> to vector<128x10xf32>
    %cst_120 = arith.constant dense<0.000000e+00> : vector<1x10xf32>
    %137 = tpu.matmul %134, %136, %cst_120 {dimension_numbers = #tpu.dot_dimension_numbers<[1], [0], [0], [1], [0, 0, 1, 1], [], []>} : vector<1x128xf32>, vector<128x10xf32>, vector<1x10xf32> -> vector<1x10xf32>
    %138 = arith.addf %133, %137 : vector<1x10xf32>
    %139 = vector.extract_strided_slice %107 {offsets = [6, 0], sizes = [1, 128], strides = [1, 1]} : vector<8x128xf32> to vector<1x128xf32>
    %c6_121 = arith.constant 6 : index
    %c0_122 = arith.constant 0 : index
    %c0_123 = arith.constant 0 : index
    %140 = vector.load %arg11[%c6_121, %c0_122, %c0_123] : memref<8x128x10xf32, #tpu.memory_space<vmem>>, vector<1x128x10xf32>
    %141 = vector.shape_cast %140 : vector<1x128x10xf32> to vector<128x10xf32>
    %cst_124 = arith.constant dense<0.000000e+00> : vector<1x10xf32>
    %142 = tpu.matmul %139, %141, %cst_124 {dimension_numbers = #tpu.dot_dimension_numbers<[1], [0], [0], [1], [0, 0, 1, 1], [], []>} : vector<1x128xf32>, vector<128x10xf32>, vector<1x10xf32> -> vector<1x10xf32>
    %143 = arith.addf %138, %142 : vector<1x10xf32>
    %144 = vector.extract_strided_slice %107 {offsets = [7, 0], sizes = [1, 128], strides = [1, 1]} : vector<8x128xf32> to vector<1x128xf32>
    %c7 = arith.constant 7 : index
    %c0_125 = arith.constant 0 : index
    %c0_126 = arith.constant 0 : index
    %145 = vector.load %arg11[%c7, %c0_125, %c0_126] : memref<8x128x10xf32, #tpu.memory_space<vmem>>, vector<1x128x10xf32>
    %146 = vector.shape_cast %145 : vector<1x128x10xf32> to vector<128x10xf32>
    %cst_127 = arith.constant dense<0.000000e+00> : vector<1x10xf32>
    %147 = tpu.matmul %144, %146, %cst_127 {dimension_numbers = #tpu.dot_dimension_numbers<[1], [0], [0], [1], [0, 0, 1, 1], [], []>} : vector<1x128xf32>, vector<128x10xf32>, vector<1x10xf32> -> vector<1x10xf32>
    %148 = arith.addf %143, %147 : vector<1x10xf32>
    %c0_128 = arith.constant 0 : index
    %c0_129 = arith.constant 0 : index
    %c0_130 = arith.constant 0 : index
    %149 = vector.load %arg13[%c0_128, %c0_129, %c0_130] : memref<1x1x10xf32, #tpu.memory_space<vmem>>, vector<1x1x10xf32>
    %150 = vector.shape_cast %149 : vector<1x1x10xf32> to vector<1x10xf32>
    %151 = vector.shape_cast %148 : vector<1x10xf32> to vector<1x1x10xf32>
    tpu.vector_store %arg13[%c0_128, %c0_129, %c0_130], %151 {strides = array<i32>} : memref<1x1x10xf32, #tpu.memory_space<vmem>>, vector<1x1x10xf32>,
    return
  }
  func.func @transform_0(%arg0: i32) -> (i32, i32, i32) {
    %c0_i32 = arith.constant 0 : i32
    %c0_i32_0 = arith.constant 0 : i32
    %c0_i32_1 = arith.constant 0 : i32
    return %arg0, %c0_i32, %c0_i32_0 : i32, i32, i32
  }
  func.func @transform_1(%arg0: i32) -> (i32, i32, i32) {
    %c0_i32 = arith.constant 0 : i32
    %c0_i32_0 = arith.constant 0 : i32
    %c0_i32_1 = arith.constant 0 : i32
    %c0_i32_2 = arith.constant 0 : i32
    return %c0_i32, %c0_i32_0, %c0_i32_1 : i32, i32, i32
  }
  func.func @transform_2(%arg0: i32) -> (i32, i32) {
    %c0_i32 = arith.constant 0 : i32
    %c0_i32_0 = arith.constant 0 : i32
    %c0_i32_1 = arith.constant 0 : i32
    return %c0_i32, %c0_i32_0 : i32, i32
  }
  func.func @transform_3(%arg0: i32) -> (i32, i32) {
    %c0_i32 = arith.constant 0 : i32
    %c0_i32_0 = arith.constant 0 : i32
    %c0_i32_1 = arith.constant 0 : i32
    return %c0_i32, %c0_i32_0 : i32, i32
  }
  func.func @transform_4(%arg0: i32) -> (i32, i32) {
    %c0_i32 = arith.constant 0 : i32
    %c0_i32_0 = arith.constant 0 : i32
    %c0_i32_1 = arith.constant 0 : i32
    return %c0_i32, %c0_i32_0 : i32, i32
  }
  func.func @transform_5(%arg0: i32) -> (i32, i32, i32) {
    %c0_i32 = arith.constant 0 : i32
    %c0_i32_0 = arith.constant 0 : i32
    %c0_i32_1 = arith.constant 0 : i32
    %c0_i32_2 = arith.constant 0 : i32
    return %c0_i32, %c0_i32_0, %c0_i32_1 : i32, i32, i32
  }
  func.func @transform_6(%arg0: i32) -> (i32, i32, i32) {
    %c0_i32 = arith.constant 0 : i32
    %c0_i32_0 = arith.constant 0 : i32
    %c0_i32_1 = arith.constant 0 : i32
    %c0_i32_2 = arith.constant 0 : i32
    return %c0_i32, %c0_i32_0, %c0_i32_1 : i32, i32, i32
  }
  func.func @transform_7(%arg0: i32) -> (i32, i32) {
    %c0_i32 = arith.constant 0 : i32
    %c0_i32_0 = arith.constant 0 : i32
    %c0_i32_1 = arith.constant 0 : i32
    return %c0_i32, %c0_i32_0 : i32, i32
  }
  func.func @transform_8(%arg0: i32) -> (i32, i32) {
    %c0_i32 = arith.constant 0 : i32
    %c0_i32_0 = arith.constant 0 : i32
    %c0_i32_1 = arith.constant 0 : i32
    return %c0_i32, %c0_i32_0 : i32, i32
  }
  func.func @transform_9(%arg0: i32) -> (i32, i32) {
    %c0_i32 = arith.constant 0 : i32
    %c0_i32_0 = arith.constant 0 : i32
    %c0_i32_1 = arith.constant 0 : i32
    return %c0_i32, %c0_i32_0 : i32, i32
  }
  func.func @transform_10(%arg0: i32) -> (i32, i32, i32) {
    %c0_i32 = arith.constant 0 : i32
    %c0_i32_0 = arith.constant 0 : i32
    %c0_i32_1 = arith.constant 0 : i32
    %c0_i32_2 = arith.constant 0 : i32
    return %c0_i32, %c0_i32_0, %c0_i32_1 : i32, i32, i32
  }
  func.func @transform_11(%arg0: i32) -> (i32, i32) {
    %c0_i32 = arith.constant 0 : i32
    %c0_i32_0 = arith.constant 0 : i32
    %c0_i32_1 = arith.constant 0 : i32
    return %c0_i32, %c0_i32_0 : i32, i32
  }
  func.func @transform_12(%arg0: i32) -> (i32, i32, i32) {
    %c0_i32 = arith.constant 0 : i32
    %c0_i32_0 = arith.constant 0 : i32
    %c0_i32_1 = arith.constant 0 : i32
    return %arg0, %c0_i32, %c0_i32_0 : i32, i32, i32
  }
}

</mosaic_0001>

<bundles_post_ra>
// kernel: tile.13
= control target key start
LH: loop header
LB: loop body
LE: loop exit
PB: predicated region body
PF: predicated region fallthrough
CT: control target
= control target key end

     0   :  { %s40_s0 = inlined_call_operand.vmem [shape: f32[4], index: 0, kind: input, shape index: {}]   ;;  %s41_s1 = inlined_call_operand.vmem [shape: f32[32,4], index: 1, kind: output, shape index: {}]  }
   0x1   :  { %v4_v0 = vld [vmem:[%s40_s0] ss:$0 sm:$0xff] }
   0x2   :  { %5 = vst [vmem:[%s41_s1] sm:$0xff] %v4_v0 }
   0x3   :  { %12 = vst [vmem:[%s41_s1 + $0x8] sm:$0xff] %v4_v0 }
   0x4   :  { %13 = vst [vmem:[%s41_s1 + $0x10] sm:$0xff] %v4_v0 }
   0x5   :  { %14 = vst [vmem:[%s41_s1 + $0x18] sm:$0xff] %v4_v0 }

// kernel: tile.14
= control target key start
LH: loop header
LB: loop body
LE: loop exit
PB: predicated region body
PF: predicated region fallthrough
CT: control target
= control target key end

     0   :  { %s259_s10 = smov 124   ;;  %s260_s11 = smov 116   ;;  %vm3_vm0 = vcmask 31744   ;;  %vm9_vm1 = vcmask 1048544   ;;  %vm15_vm2 = vcmask 1015744   ;;  %vm21_vm3 = vcmask 982944   ;;  %s399_s0 = inlined_call_operand.vmem [shape: f32[32,4], index: 0, kind: input, shape index: {}]   ;;  %s400_s1 = inlined_call_operand.vmem [shape: f32[1,128], index: 1, kind: output, shape index: {}]  }
   0x1   :  { %v197_v0 = vld [vmem:[%s399_s0 + $0x1f] sm:$0x1]   ;;  %v199_v1 = vld [vmem:[%s399_s0 + $0x1d] sm:$0x1]   ;;  %v201_v2 = vld [vmem:[%s399_s0 + $0x1b] sm:$0x1]  }
   0x2   :  { %7 = vrot.lane.b32.xlu0 %v197_v0, %s259_s10  ;;  %19 = vrot.lane.b32.xlu1 %v199_v1, %s260_s11  ;;  %s261_s14 = smov 108   ;;  %v198_v3 = vld [vmem:[%s399_s0 + $0x1e] sm:$0x1]   ;;  %v200_v4 = vld [vmem:[%s399_s0 + $0x1c] sm:$0x1]   ;;  %s262_s19 = smov 120  }
   0x3   :  { %31 = vrot.lane.b32.xlu2 %v201_v2, %s261_s14  ;;  %s263_s20 = smov 112   ;;  %v202_v5 = vld [vmem:[%s399_s0 + $0x1a] sm:$0x1]   ;;  %s264_s23 = smov 104   ;;  %v203_v6 = vld [vmem:[%s399_s0 + $0x19] sm:$0x1]  }
   0x4   :  { %v204_v7 = vld [vmem:[%s399_s0 + $0x18] sm:$0x1]   ;;  %s265_s28 = smov 100   ;;  %s266_s29 = smov 96   ;;  %v205_v8 = vld [vmem:[%s399_s0 + $0x17] sm:$0x1]  }
   0x5   :  { %s267_s3 = smov 92   ;;  %v206_v9 = vld [vmem:[%s399_s0 + $0x16] sm:$0x1]   ;;  %v207_v10 = vld [vmem:[%s399_s0 + $0x15] sm:$0x1]   ;;  %s268_s8 = smov 88  }
   0x6   :  { %s269_s9 = smov 84   ;;  %v208_v11 = vld [vmem:[%s399_s0 + $0x14] sm:$0x1]   ;;  %s270_s12 = smov 80   ;;  %v209_v12 = vld [vmem:[%s399_s0 + $0x13] sm:$0x1]  }
   0x7   :  { %v210_v13 = vld [vmem:[%s399_s0 + $0x12] sm:$0x1]   ;;  %s271_s17 = smov 76   ;;  %s272_s18 = smov 72   ;;  %v211_v14 = vld [vmem:[%s399_s0 + $0x11] sm:$0x1]  }
   0x8   :  { %s273_s21 = smov 68   ;;  %v212_v15 = vld [vmem:[%s399_s0 + $0x10] sm:$0x1]   ;;  %v213_v16 = vld [vmem:[%s399_s0 + $0xf] sm:$0x1]   ;;  %s274_s26 = smov 64  }
   0x9   :  { %s275_s27 = smov 60   ;;  %v214_v17 = vld [vmem:[%s399_s0 + $0xe] sm:$0x1]   ;;  %s276_s30 = smov 56   ;;  %v215_v18 = vld [vmem:[%s399_s0 + $0xd] sm:$0x1]  }
   0xa   :  { %13 = vrot.lane.b32.xlu0 %v198_v3, %s262_s19  ;;  %25 = vrot.lane.b32.xlu1 %v200_v4, %s263_s20  ;;  %v216_v19 = vld [vmem:[%s399_s0 + $0xc] sm:$0x1]   ;;  %s277_s6 = smov 52   ;;  %s278_s7 = smov 48   ;;  %v217_v20 = vld [vmem:[%s399_s0 + $0xb] sm:$0x1]  }
   0xb   :  { %37 = vrot.lane.b32.xlu2 %v202_v5, %s264_s23  ;;  %s279_s10 = smov 44   ;;  %v218_v21 = vld [vmem:[%s399_s0 + $0xa] sm:$0x1]   ;;  %v219_v22 = vld [vmem:[%s399_s0 + $0x9] sm:$0x1]   ;;  %s280_s15 = smov 40  }
   0xc   :  { %s281_s16 = smov 36   ;;  %v220_v23 = vld [vmem:[%s399_s0 + $0x8] sm:$0x1]   ;;  %s282_s19 = smov 32   ;;  %v221_v24 = vld [vmem:[%s399_s0 + $0x7] sm:$0x1]  }
   0xd   :  { %v222_v25 = vld [vmem:[%s399_s0 + $0x6] sm:$0x1]   ;;  %s283_s24 = smov 28   ;;  %s284_s25 = smov 24   ;;  %v223_v26 = vld [vmem:[%s399_s0 + $0x5] sm:$0x1]  }
   0xe   :  { %v224_v27 = vld [vmem:[%s399_s0 + $0x4] sm:$0x1]   ;;  %v225_v28 = vld [vmem:[%s399_s0 + $0x3] sm:$0x1]   ;;  %s286_s4 = smov 16   ;;  %s287_s5 = smov 12  }
   0xf   :  { %v226_v29 = vld [vmem:[%s399_s0 + $0x2] sm:$0x1]   ;;  %v227_v30 = vld [vmem:[%s399_s0 + $0x1] sm:$0x1]   ;;  %s289_s11 = smov 4   ;;  %vm27_vm4 = vcmask 950144  }
  0x10   :  { %v2_v31 = vld [vmem:[%s399_s0] sm:$0x1]   ;;  %vm33_vm5 = vcmask 917344   ;;  %vm39_vm6 = vcmask 884544   ;;  %vm45_vm7 = vcmask 851744   ;;  %vm51_vm8 = vcmask 818944  }
  0x11   :  { %4 = vst.msk [vmem:[#allocation0] sm:$0x1] %vm3_vm0, %v2_v31   ;;  %vm57_vm9 = vcmask 786144   ;;  %vm63_vm10 = vcmask 753344   ;;  %vm69_vm11 = vcmask 720544   ;;  %vm75_vm12 = vcmask 687744  }
  0x12   :  { %43 = vrot.lane.b32.xlu0 %v203_v6, %s265_s28  ;;  %49 = vrot.lane.b32.xlu1 %v204_v7, %s266_s29  ;;  %s285_s28 = smov 20   ;;  %vm81_vm13 = vcmask 654944   ;;  %vm87_vm14 = vcmask 622144   ;;  %vm93_vm15 = vcmask 589344   ;;  %vm99_vm0 = vcmask 556544  }
  0x13   :  { %55 = vrot.lane.b32.xlu2 %v205_v8, %s267_s3 }
  0x1a   :  { %61 = vrot.lane.b32.xlu0 %v206_v9, %s268_s8  ;;  %67 = vrot.lane.b32.xlu1 %v207_v10, %s269_s9  ;;  %s288_s8 = smov 8  }
  0x1b   :  { %73 = vrot.lane.b32.xlu2 %v208_v11, %s270_s12 }
  0x22   :  { %79 = vrot.lane.b32.xlu0 %v209_v12, %s271_s17  ;;  %85 = vrot.lane.b32.xlu1 %v210_v13, %s272_s18 }
  0x23   :  { %91 = vrot.lane.b32.xlu2 %v211_v14, %s273_s21 }
  0x2a   :  { %97 = vrot.lane.b32.xlu0 %v212_v15, %s274_s26  ;;  %103 = vrot.lane.b32.xlu1 %v213_v16, %s275_s27 }
  0x2b   :  { %109 = vrot.lane.b32.xlu2 %v214_v17, %s276_s30 }
  0x32   :  { %115 = vrot.lane.b32.xlu0 %v215_v18, %s277_s6  ;;  %121 = vrot.lane.b32.xlu1 %v216_v19, %s278_s7 }
  0x33   :  { %127 = vrot.lane.b32.xlu2 %v217_v20, %s279_s10 }
  0x3a   :  { %133 = vrot.lane.b32.xlu0 %v218_v21, %s280_s15  ;;  %139 = vrot.lane.b32.xlu1 %v219_v22, %s281_s16 }
  0x3b   :  { %145 = vrot.lane.b32.xlu2 %v220_v23, %s282_s19 }
  0x42   :  { %151 = vrot.lane.b32.xlu0 %v221_v24, %s283_s24  ;;  %157 = vrot.lane.b32.xlu1 %v222_v25, %s284_s25 }
  0x43   :  { %163 = vrot.lane.b32.xlu2 %v223_v26, %s285_s28 }
  0x4a   :  { %169 = vrot.lane.b32.xlu0 %v224_v27, %s286_s4  ;;  %175 = vrot.lane.b32.xlu1 %v225_v28, %s287_s5 }
  0x4b   :  { %181 = vrot.lane.b32.xlu2 %v226_v29, %s288_s8 }
  0x52   :  { %187 = vrot.lane.b32.xlu0 %v227_v30, %s289_s11 }
  0x5d   :  { %v32_v32 = vpop.permute.xlu2 %31  }
  0x65   :  { %v38_v33 = vpop.permute.xlu2 %37  }
  0x6d   :  { %v56_v34 = vpop.permute.xlu2 %55  }
  0x74   :  { %v8_v35 = vpop.permute.xlu0 %7   ;;  %v20_v36 = vpop.permute.xlu1 %19  }
  0x75   :  { %10 = vst.msk [vmem:[#allocation0] sm:$0x1] %vm9_vm1, %v8_v35   ;;  %v74_v37 = vpop.permute.xlu2 %73   ;;  %vm105_vm1 = vcmask 523744  }
  0x7c   :  { %v14_v38 = vpop.permute.xlu0 %13   ;;  %v26_v39 = vpop.permute.xlu1 %25  }
  0x7d   :  { %16 = vst.msk [vmem:[#allocation0] sm:$0x1] %vm15_vm2, %v14_v38   ;;  %v92_v40 = vpop.permute.xlu2 %91   ;;  %vm111_vm2 = vcmask 490944  }
  0x7e   :  { %22 = vst.msk [vmem:[#allocation0] sm:$0x1] %vm21_vm3, %v20_v36   ;;  %vm117_vm3 = vcmask 458144  }
  0x7f   :  { %28 = vst.msk [vmem:[#allocation0] sm:$0x1] %vm27_vm4, %v26_v39   ;;  %vm123_vm4 = vcmask 425344  }
  0x80   :  { %34 = vst.msk [vmem:[#allocation0] sm:$0x1] %vm33_vm5, %v32_v32   ;;  %vm129_vm5 = vcmask 392544  }
  0x81   :  { %40 = vst.msk [vmem:[#allocation0] sm:$0x1] %vm39_vm6, %v38_v33   ;;  %vm135_vm6 = vcmask 359744  }
  0x84   :  { %v44_v41 = vpop.permute.xlu0 %43   ;;  %v50_v42 = vpop.permute.xlu1 %49  }
  0x85   :  { %46 = vst.msk [vmem:[#allocation0] sm:$0x1] %vm45_vm7, %v44_v41   ;;  %v110_v43 = vpop.permute.xlu2 %109   ;;  %vm141_vm7 = vcmask 326944  }
  0x86   :  { %52 = vst.msk [vmem:[#allocation0] sm:$0x1] %vm51_vm8, %v50_v42   ;;  %vm147_vm8 = vcmask 294144  }
  0x87   :  { %58 = vst.msk [vmem:[#allocation0] sm:$0x1] %vm57_vm9, %v56_v34   ;;  %vm153_vm9 = vcmask 261344  }
  0x8c   :  { %v62_v44 = vpop.permute.xlu0 %61   ;;  %v68_v45 = vpop.permute.xlu1 %67  }
  0x8d   :  { %64 = vst.msk [vmem:[#allocation0] sm:$0x1] %vm63_vm10, %v62_v44   ;;  %v128_v46 = vpop.permute.xlu2 %127   ;;  %vm159_vm10 = vcmask 228544  }
  0x8e   :  { %70 = vst.msk [vmem:[#allocation0] sm:$0x1] %vm69_vm11, %v68_v45   ;;  %vm165_vm11 = vcmask 195744  }
  0x8f   :  { %76 = vst.msk [vmem:[#allocation0] sm:$0x1] %vm75_vm12, %v74_v37   ;;  %vm171_vm12 = vcmask 162944  }
  0x94   :  { %v80_v47 = vpop.permute.xlu0 %79   ;;  %v86_v48 = vpop.permute.xlu1 %85  }
  0x95   :  { %82 = vst.msk [vmem:[#allocation0] sm:$0x1] %vm81_vm13, %v80_v47   ;;  %v146_v49 = vpop.permute.xlu2 %145   ;;  %vm177_vm13 = vcmask 130144  }
  0x96   :  { %88 = vst.msk [vmem:[#allocation0] sm:$0x1] %vm87_vm14, %v86_v48   ;;  %vm183_vm14 = vcmask 97344  }
  0x97   :  { %94 = vst.msk [vmem:[#allocation0] sm:$0x1] %vm93_vm15, %v92_v40   ;;  %vm189_vm15 = vcmask 64544  }
  0x9c   :  { %v98_v50 = vpop.permute.xlu0 %97   ;;  %v104_v51 = vpop.permute.xlu1 %103  }
  0x9d   :  { %100 = vst.msk [vmem:[#allocation0] sm:$0x1] %vm99_vm0, %v98_v50   ;;  %v164_v52 = vpop.permute.xlu2 %163  }
  0x9e   :  { %106 = vst.msk [vmem:[#allocation0] sm:$0x1] %vm105_vm1, %v104_v51  }
  0x9f   :  { %112 = vst.msk [vmem:[#allocation0] sm:$0x1] %vm111_vm2, %v110_v43  }
  0xa4   :  { %v116_v53 = vpop.permute.xlu0 %115   ;;  %v122_v54 = vpop.permute.xlu1 %121  }
  0xa5   :  { %118 = vst.msk [vmem:[#allocation0] sm:$0x1] %vm117_vm3, %v116_v53   ;;  %v182_v55 = vpop.permute.xlu2 %181  }
  0xa6   :  { %124 = vst.msk [vmem:[#allocation0] sm:$0x1] %vm123_vm4, %v122_v54  }
  0xa7   :  { %130 = vst.msk [vmem:[#allocation0] sm:$0x1] %vm129_vm5, %v128_v46  }
  0xac   :  { %v134_v56 = vpop.permute.xlu0 %133   ;;  %v140_v57 = vpop.permute.xlu1 %139  }
  0xad   :  { %136 = vst.msk [vmem:[#allocation0] sm:$0x1] %vm135_vm6, %v134_v56  }
  0xae   :  { %142 = vst.msk [vmem:[#allocation0] sm:$0x1] %vm141_vm7, %v140_v57  }
  0xaf   :  { %148 = vst.msk [vmem:[#allocation0] sm:$0x1] %vm147_vm8, %v146_v49  }
  0xb4   :  { %v152_v58 = vpop.permute.xlu0 %151   ;;  %v158_v59 = vpop.permute.xlu1 %157  }
  0xb5   :  { %154 = vst.msk [vmem:[#allocation0] sm:$0x1] %vm153_vm9, %v152_v58  }
  0xb6   :  { %160 = vst.msk [vmem:[#allocation0] sm:$0x1] %vm159_vm10, %v158_v59  }
  0xb7   :  { %166 = vst.msk [vmem:[#allocation0] sm:$0x1] %vm165_vm11, %v164_v52  }
  0xbc   :  { %v170_v60 = vpop.permute.xlu0 %169   ;;  %v176_v61 = vpop.permute.xlu1 %175  }
  0xbd   :  { %172 = vst.msk [vmem:[#allocation0] sm:$0x1] %vm171_vm12, %v170_v60  }
  0xbe   :  { %178 = vst.msk [vmem:[#allocation0] sm:$0x1] %vm177_vm13, %v176_v61  }
  0xbf   :  { %184 = vst.msk [vmem:[#allocation0] sm:$0x1] %vm183_vm14, %v182_v55  }
  0xc4   :  { %v188_v62 = vpop.permute.xlu0 %187  }
  0xc5   :  { %190 = vst.msk [vmem:[#allocation0] sm:$0x1] %vm189_vm15, %v188_v62  }
  0xcc   :  { %v193_v63 = vld [vmem:[#allocation0] sm:$0x1] }
  0xcd   :  { %196 = vst [vmem:[%s400_s1] sm:$0x1] %v193_v63 }

// kernel: tile.18
= control target key start
LH: loop header
LB: loop body
LE: loop exit
PB: predicated region body
PF: predicated region fallthrough
CT: control target
= control target key end

     0   :  { %s22_s0 = inlined_call_operand.vmem [shape: f32[16], index: 0, kind: input, shape index: {}]   ;;  %s23_s1 = inlined_call_operand.vmem [shape: f32[8,16], index: 1, kind: output, shape index: {}]  }
   0x1   :  { %v4_v0 = vld [vmem:[%s22_s0] ss:$0 sm:$0xff] }
   0x2   :  { %5 = vst [vmem:[%s23_s1] sm:$0xff] %v4_v0 }

// kernel: tile.19
= control target key start
LH: loop header
LB: loop body
LE: loop exit
PB: predicated region body
PF: predicated region fallthrough
CT: control target
= control target key end

     0   :  { %s67_s10 = smov 112   ;;  %s68_s11 = smov 80   ;;  %vm3_vm0 = vcmask 130048   ;;  %vm9_vm1 = vcmask 1048448   ;;  %vm15_vm2 = vcmask 917248   ;;  %vm21_vm3 = vcmask 786048   ;;  %s111_s0 = inlined_call_operand.vmem [shape: f32[8,16], index: 0, kind: input, shape index: {}]   ;;  %s112_s1 = inlined_call_operand.vmem [shape: f32[1,128], index: 1, kind: output, shape index: {}]  }
   0x1   :  { %v53_v0 = vld [vmem:[%s111_s0 + $0x7] sm:$0x1]   ;;  %v55_v1 = vld [vmem:[%s111_s0 + $0x5] sm:$0x1]   ;;  %v57_v2 = vld [vmem:[%s111_s0 + $0x3] sm:$0x1]  }
   0x2   :  { %7 = vrot.lane.b32.xlu0 %v53_v0, %s67_s10  ;;  %19 = vrot.lane.b32.xlu1 %v55_v1, %s68_s11  ;;  %s69_s14 = smov 48   ;;  %v54_v3 = vld [vmem:[%s111_s0 + $0x6] sm:$0x1]   ;;  %v56_v4 = vld [vmem:[%s111_s0 + $0x4] sm:$0x1]   ;;  %s70_s21 = smov 96  }
   0x3   :  { %31 = vrot.lane.b32.xlu2 %v57_v2, %s69_s14  ;;  %v58_v5 = vld [vmem:[%s111_s0 + $0x2] sm:$0x1]   ;;  %s71_s22 = smov 64   ;;  %s72_s23 = smov 32   ;;  %v59_v6 = vld [vmem:[%s111_s0 + $0x1] sm:$0x1]  }
   0x4   :  { %s73_s26 = smov 16   ;;  %v2_v7 = vld [vmem:[%s111_s0] sm:$0x1]   ;;  %vm27_vm4 = vcmask 654848   ;;  %vm33_vm5 = vcmask 523648   ;;  %vm39_vm6 = vcmask 392448  }
   0x5   :  { %4 = vst.msk [vmem:[#allocation0] sm:$0x1] %vm3_vm0, %v2_v7   ;;  %vm45_vm7 = vcmask 261248  }
   0xa   :  { %13 = vrot.lane.b32.xlu0 %v54_v3, %s70_s21  ;;  %25 = vrot.lane.b32.xlu1 %v56_v4, %s71_s22 }
   0xb   :  { %37 = vrot.lane.b32.xlu2 %v58_v5, %s72_s23 }
  0x12   :  { %43 = vrot.lane.b32.xlu0 %v59_v6, %s73_s26 }
  0x5d   :  { %v32_v8 = vpop.permute.xlu2 %31  }
  0x65   :  { %v38_v9 = vpop.permute.xlu2 %37  }
  0x74   :  { %v8_v10 = vpop.permute.xlu0 %7   ;;  %v20_v11 = vpop.permute.xlu1 %19  }
  0x75   :  { %10 = vst.msk [vmem:[#allocation0] sm:$0x1] %vm9_vm1, %v8_v10  }
  0x7c   :  { %v14_v12 = vpop.permute.xlu0 %13   ;;  %v26_v13 = vpop.permute.xlu1 %25  }
  0x7d   :  { %16 = vst.msk [vmem:[#allocation0] sm:$0x1] %vm15_vm2, %v14_v12  }
  0x7e   :  { %22 = vst.msk [vmem:[#allocation0] sm:$0x1] %vm21_vm3, %v20_v11  }
  0x7f   :  { %28 = vst.msk [vmem:[#allocation0] sm:$0x1] %vm27_vm4, %v26_v13  }
  0x80   :  { %34 = vst.msk [vmem:[#allocation0] sm:$0x1] %vm33_vm5, %v32_v8  }
  0x81   :  { %40 = vst.msk [vmem:[#allocation0] sm:$0x1] %vm39_vm6, %v38_v9  }
  0x84   :  { %v44_v14 = vpop.permute.xlu0 %43  }
  0x85   :  { %46 = vst.msk [vmem:[#allocation0] sm:$0x1] %vm45_vm7, %v44_v14  }
  0x8c   :  { %v49_v15 = vld [vmem:[#allocation0] sm:$0x1] }
  0x8d   :  { %52 = vst [vmem:[%s112_s1] sm:$0x1] %v49_v15 }

// kernel: shallow_forward.1
= control target key start
LH: loop header
LB: loop body
LE: loop exit
PB: predicated region body
PF: predicated region fallthrough
CT: control target
= control target key end

     0   :  { %17 = vsyncpa [#allocation3], 0  ;;  %s3452_s0 = inlined_call_operand.vmem [shape: f32[2,36,96], index: 0, kind: input, shape index: {}]   ;;  %s3453_s1 = inlined_call_operand.vmem [shape: f32[5,96,128], index: 1, kind: input, shape index: {}]   ;;  %s3454_s2 = inlined_call_operand.vmem [shape: f32[1,128], index: 2, kind: input, shape index: {}]   ;;  %s3455_s3 = inlined_call_operand.vmem [shape: f32[128,128], index: 3, kind: input, shape index: {}]   ;;  %s3456_s4 = inlined_call_operand.vmem [shape: f32[32,32], index: 4, kind: input, shape index: {}]   ;;  %s3457_s5 = inlined_call_operand.vmem [shape: f32[7,8,32], index: 5, kind: input, shape index: {}]   ;;  %s3458_s6 = inlined_call_operand.vmem [shape: f32[7,128,128], index: 6, kind: input, shape index: {}]   ;;  %s3459_s7 = inlined_call_operand.vmem [shape: f32[1,128], index: 7, kind: input, shape index: {}]   ;;  %s3460_s8 = inlined_call_operand.vmem [shape: f32[128,128], index: 8, kind: input, shape index: {}]   ;;  %s3461_s9 = inlined_call_operand.vmem [shape: f32[8,8], index: 9, kind: input, shape index: {}]   ;;  %s3462_s10 = inlined_call_operand.vmem [shape: f32[8,128,10], index: 10, kind: input, shape index: {}]   ;;  %s3463_s11 = inlined_call_operand.vmem [shape: f32[1,10], index: 11, kind: input, shape index: {}]   ;;  %s3464_s12 = inlined_call_operand.hbm [shape: f32[2,1,10], index: 12, kind: output, shape index: {}]  }
   0x1   :  { %19 = vsyncpa [#allocation3 + $0x1], 0  ;;  %s2211_s21 = smov 0   ;;  %s2213_s22 = smov 0  }
   0x2   :  { %s2215_s23 = smov 0   ;;  %s2217_s24 = smov 0  }
   0x3 LB: > { %3468 = sst [smem:[#allocation5_spill]] %s2140_s23  ;;  %s2232_s25 = sadd.s32 4294967295, %s2144_s24   ;;  %s2144_s24 = sphi %s2217_s24, %s3473_s24   ;;  %s2140_s23 = sphi %s2215_s23, %s3475_s23   ;;  %s2136_s22 = sphi %s2213_s22, %s3477_s22   ;;  %s2132_s21 = sphi %s2211_s21, %s3476_s21  }
   0x4   : > { %s1739_s26 = sadd.s32 4294967294, %s2144_s24   ;;  %s2236_s27 = sadd.s32 1, %s2144_s24  }
   0x5   : > { %3469 = sst [smem:[#allocation6_spill]] %s2236_s27  ;;  %s289_s28 = sadd.s32 1, %s2140_s23 }
   0x6   : > { %s286_s29 = ssub.s32 %s2144_s24, %s2236_s27  ;;  %p299_p0 = scmp.ne.s32.totalorder %s2140_s23, %s2136_s22 }
   0x7   : > { %p287_p1 = scmp.eq.s32.totalorder %s286_s29, 0  ;;  %p300_p2 = scmp.eq.s32.totalorder %s2232_s25, 1 }
   0x8   : > { %p305_p3 = scmp.ne.s32.totalorder %s2136_s22, %s2132_s21  ;;  %p306_p4 = scmp.eq.s32.totalorder %s1739_s26, 1 }
   0x9   : > { %s2247_s30 = scalar_select %p287_p1, %s2140_s23, %s289_s28  }
   0xa   : > { %p2249_p5 = por %p300_p2, %p299_p0  ;;  %p2253_p6 = por %p306_p4, %p305_p3 }
   0xb   : > { %3470 = sst [smem:[#allocation7_spill]] %s2247_s30  ;;  %p1742_p7 = scmp.ge.s32.totalorder %s2144_s24, 1 }
   0xc   : > { %p365_p8 = scmp.lt.s32.totalorder %s2144_s24, 3 }
   0xe   : > { %p366_p9 = pnand %p1742_p7, %p365_p8 }
   0xf   : > { %p406_p10 = scmp.lt.s32.totalorder (!%p366_p9), %s2232_s25, 1  ;;  %s404_s20 = sand.u32 (!%p366_p9), 1, %s2136_s22  }
  0x10   : > { %369 = sbr.rel (%p366_p9) target bundleno = 1511 (0x5e7), region = 68  ;;  %s1680_s29 = scalar_lea.hbm (!%p366_p9), %s3464_s12, %s2232_s25 }
  0x11   : > { %s405_s15 = scalar_lea.vmem (!%p366_p9), [#allocation2], %s404_s20  ;;  %s1684_s17 = sshll.u32 (!%p366_p9), %s1680_s29, 4  ;;  %s1685_s17 = int_to_ptr.hbm [resolvable:$true] %s1684_s17 }
  0x12   : > { %s1682_s16 = sshll.u32 (!%p366_p9), %s405_s15, 4  ;;  %s2102_s23 = scalar_lea.hbm (!%p366_p9), %s3464_s12, 2  ;;  %s1683_s16 = int_to_ptr.vmem [resolvable:$true] %s1682_s16 }
  0x15   : > { %v1755_v0 = vld [vmem:[%s3453_s1 + $0xb8] sm:$0xff]  ;;  %v1754_v3 = vld [vmem:[%s3453_s1 + $0xb0] sm:$0xff]  ;;  %v1753_v7 = vld [vmem:[%s3453_s1 + $0xa8] sm:$0xff]  ;;  %s2302_s26 = scalar_select %p406_p10, %s2232_s25, 1  ;;  %vm446_vm0 = vcmask 1046528   ;;  %vm544_vm1 = vcmask 1045504  }
  0x16   : > { %v427_v1 = vld [vmem:[%s3453_s1 + $0x58] sm:$0xff]  ;;  %469 = vmatpush.msra.mxu0 %v1755_v0  ;;  %v426_v4 = vld [vmem:[%s3453_s1 + $0x50] sm:$0xff]  ;;  %v425_v8 = vld [vmem:[%s3453_s1 + $0x48] sm:$0xff]  ;;  %vm608_vm2 = vcmask 1044480   ;;  %vm456_vm3 = vcmask 785408   ;;  %vm672_vm4 = vcmask 1043456  }
  0x17   : > { %v1775_v2 = vld [vmem:[%s3453_s1 + $0x118] sm:$0xff]  ;;  %506 = vmatpush.msra.mxu1 %v427_v1  ;;  %v1774_v5 = vld [vmem:[%s3453_s1 + $0x110] sm:$0xff]  ;;  %v1773_v9 = vld [vmem:[%s3453_s1 + $0x108] sm:$0xff]  ;;  %s2040_s19 = smul.u32 40, %s2302_s26  ;;  %vm800_vm5 = vcmask 261120   ;;  %vm1326_vm6 = vcmask 64512  }
  0x18   : > { %566 = vmatpush.msra.mxu2 %v1775_v2  ;;  %v1791_v6 = vld [vmem:[%s3453_s1 + $0x178] sm:$0xff]  ;;  %470 = vmatpush.msra.mxu0 %v1754_v3  ;;  %v1790_v10 = vld [vmem:[%s3453_s1 + $0x170] sm:$0xff]  ;;  %v1752_v11 = vld [vmem:[%s3453_s1 + $0xa0] sm:$0xff]  ;;  %vm1669_vm7 = vcmask 73728   ;;  %s1672_s26 = scalar_lea.sflag [#allocation3], %s404_s20 }
  0x19   : > { %507 = vmatpush.msra.mxu1 %v426_v4  ;;  %630 = vmatpush.msra.mxu3 %v1791_v6  ;;  %v424_v12 = vld [vmem:[%s3453_s1 + $0x40] sm:$0xff]  ;;  %v1789_v14 = vld [vmem:[%s3453_s1 + $0x168] sm:$0xff]  ;;  %v1751_v15 = vld [vmem:[%s3453_s1 + $0x98] sm:$0xff]  ;;  %s2356_s27 = scalar_lea.vmem %s3452_s0, %s2040_s19 }
  0x1a   : > { %567 = vmatpush.msra.mxu2 %v1774_v5  ;;  %471 = vmatpush.msra.mxu0 %v1753_v7  ;;  %v1772_v13 = vld [vmem:[%s3453_s1 + $0x100] sm:$0xff]  ;;  %v423_v16 = vld [vmem:[%s3453_s1 + $0x38] sm:$0xff]  ;;  %v1750_v19 = vld [vmem:[%s3453_s1 + $0x90] sm:$0xff] }
  0x1b   : > { %508 = vmatpush.msra.mxu1 %v425_v8  ;;  %631 = vmatpush.msra.mxu3 %v1790_v10  ;;  %v1771_v17 = vld [vmem:[%s3453_s1 + $0xf8] sm:$0xff]  ;;  %v1788_v18 = vld [vmem:[%s3453_s1 + $0x160] sm:$0xff]  ;;  %v422_v20 = vld [vmem:[%s3453_s1 + $0x30] sm:$0xff] }
  0x1c   : > { %568 = vmatpush.msra.mxu2 %v1773_v9  ;;  %472 = vmatpush.msra.mxu0 %v1752_v11  ;;  %v1770_v21 = vld [vmem:[%s3453_s1 + $0xf0] sm:$0xff]  ;;  %v1787_v22 = vld [vmem:[%s3453_s1 + $0x158] sm:$0xff]  ;;  %v1749_v23 = vld [vmem:[%s3453_s1 + $0x88] sm:$0xff] }
  0x1d   : > { %509 = vmatpush.msra.mxu1 %v424_v12  ;;  %632 = vmatpush.msra.mxu3 %v1789_v14  ;;  %v421_v24 = vld [vmem:[%s3453_s1 + $0x28] sm:$0xff]  ;;  %v1786_v26 = vld [vmem:[%s3453_s1 + $0x150] sm:$0xff]  ;;  %v1748_v27 = vld [vmem:[%s3453_s1 + $0x80] sm:$0xff] }
  0x1e   : > { %569 = vmatpush.msra.mxu2 %v1772_v13  ;;  %473 = vmatpush.msra.mxu0 %v1751_v15  ;;  %v1769_v25 = vld [vmem:[%s3453_s1 + $0xe8] sm:$0xff]  ;;  %v420_v28 = vld [vmem:[%s3453_s1 + $0x20] sm:$0xff]  ;;  %v1747_v31 = vld [vmem:[%s3453_s1 + $0x78] sm:$0xff] }
  0x1f   : > { %510 = vmatpush.msra.mxu1 %v423_v16  ;;  %633 = vmatpush.msra.mxu3 %v1788_v18  ;;  %v1768_v29 = vld [vmem:[%s3453_s1 + $0xe0] sm:$0xff]  ;;  %v1785_v30 = vld [vmem:[%s3453_s1 + $0x148] sm:$0xff]  ;;  %v419_v32 = vld [vmem:[%s3453_s1 + $0x18] sm:$0xff] }
  0x20   : > { %570 = vmatpush.msra.mxu2 %v1771_v17  ;;  %474 = vmatpush.msra.mxu0 %v1750_v19  ;;  %v1767_v33 = vld [vmem:[%s3453_s1 + $0xd8] sm:$0xff]  ;;  %v1784_v34 = vld [vmem:[%s3453_s1 + $0x140] sm:$0xff]  ;;  %v1746_v36 = vld [vmem:[%s3453_s1 + $0x70] sm:$0xff] }
  0x21   : > { %511 = vmatpush.msra.mxu1 %v422_v20  ;;  %634 = vmatpush.msra.mxu3 %v1787_v22  ;;  %v2377_v35 = vld [vmem:[%s2356_s27] sm:$0xff]  ;;  %v418_v37 = vld [vmem:[%s3453_s1 + $0x10] sm:$0xff]  ;;  %v2386_v38 = vld [vmem:[%s2356_s27 + $0x8] sm:$0xff] }
  0x22   : > { %571 = vmatpush.msra.mxu2 %v1770_v21  ;;  %475 = vmatpush.msra.mxu0 %v1749_v23  ;;  %v1766_v39 = vld [vmem:[%s3453_s1 + $0xd0] sm:$0xff]  ;;  %v1783_v40 = vld [vmem:[%s3453_s1 + $0x138] sm:$0xff]  ;;  %v1745_v41 = vld [vmem:[%s3453_s1 + $0x68] sm:$0xff]  ;;  %v447_v43 = vrot.slane %v2377_v35, 1  ;;  %v448_v44 = vrot.slane %v2386_v38, 1  ;;  %v545_v47 = vrot.slane %v2377_v35, 2 }
  0x23   : > { %512 = vmatpush.msra.mxu1 %v421_v24  ;;  %635 = vmatpush.msra.mxu3 %v1786_v26  ;;  %v417_v42 = vld [vmem:[%s3453_s1 + $0x8] sm:$0xff]  ;;  %v1782_v46 = vld [vmem:[%s3453_s1 + $0x130] sm:$0xff]  ;;  %v546_v48 = vrot.slane %v2386_v38, 2  ;;  %v1744_v49 = vld [vmem:[%s3453_s1 + $0x60] sm:$0xff]  ;;  %v609_v51 = vrot.slane %v2377_v35, 3  ;;  %v610_v52 = vrot.slane %v2386_v38, 3 }
  0x24   : > { %572 = vmatpush.msra.mxu2 %v1769_v25  ;;  %476 = vmatpush.msra.mxu0 %v1748_v27  ;;  %v1765_v45 = vld [vmem:[%s3453_s1 + $0xc8] sm:$0xff]  ;;  %v416_v50 = vld [vmem:[%s3453_s1] sm:$0xff]  ;;  %v449_v55 = vsel %vm446_vm0, %v447_v43, %v448_v44  ;;  %v2430_v58 = vld [vmem:[%s2356_s27 + $0x10] sm:$0xff] }
  0x25   : > { %513 = vmatpush.msra.mxu1 %v420_v28  ;;  %636 = vmatpush.msra.mxu3 %v1785_v30  ;;  %v1764_v53 = vld [vmem:[%s3453_s1 + $0xc0] sm:$0xff]  ;;  %v1781_v54 = vld [vmem:[%s3453_s1 + $0x128] sm:$0xff]  ;;  %v547_v56 = vsel %vm544_vm1, %v545_v47, %v546_v48  ;;  %v611_v59 = vsel %vm608_vm2, %v609_v51, %v610_v52  ;;  %v1807_v60 = vld [vmem:[%s3453_s1 + $0x1d8] sm:$0xff]  ;;  %v450_v61 = vrot.slane %v2430_v58, 1  ;;  %v548_v63 = vrot.slane %v2430_v58, 2 }
  0x26   : > { %573 = vmatpush.msra.mxu2 %v1768_v29  ;;  %477 = vmatpush.msra.mxu0 %v1747_v31  ;;  %v1780_v57 = vld [vmem:[%s3453_s1 + $0x120] sm:$0xff]  ;;  %v1806_v62 = vld [vmem:[%s3453_s1 + $0x1d0] sm:$0xff]  ;;  %v612_v0 = vrot.slane %v2430_v58, 3  ;;  %v1805_v1 = vld [vmem:[%s3453_s1 + $0x1c8] sm:$0xff]  ;;  %v673_v28 = vrot.slane %v2377_v35, 4  ;;  %v674_v29 = vrot.slane %v2386_v38, 4 }
  0x27   : > { %514 = vmatpush.msra.mxu1 %v419_v32  ;;  %637 = vmatpush.msra.mxu3 %v1784_v34  ;;  %v451_v2 = vsel %vm446_vm0, %v448_v44, %v450_v61  ;;  %v549_v3 = vsel %vm544_vm1, %v546_v48, %v548_v63  ;;  %v1804_v4 = vld [vmem:[%s3453_s1 + $0x1c0] sm:$0xff]  ;;  %v414_v5 = vld [vmem:[%s2356_s27 + $0x18] sm:$0xff]  ;;  %v1802_v10 = vld [vmem:[%s3453_s1 + $0x1b0] sm:$0xff]  ;;  %v676_v31 = vrot.slane %v2430_v58, 4 }
  0x28   : > { %574 = vmatpush.msra.mxu2 %v1767_v33  ;;  %478 = vmatpush.msra.mxu0 %v1746_v36  ;;  %v613_v6 = vsel %vm608_vm2, %v610_v52, %v612_v0  ;;  %v1803_v7 = vld [vmem:[%s3453_s1 + $0x1b8] sm:$0xff]  ;;  %v452_v8 = vrot.slane %v414_v5, 1  ;;  %v550_v9 = vrot.slane %v414_v5, 2  ;;  %v614_v11 = vrot.slane %v414_v5, 3  ;;  %v1801_v12 = vld [vmem:[%s3453_s1 + $0x1a8] sm:$0xff]  ;;  %v1800_v15 = vld [vmem:[%s3453_s1 + $0x1a0] sm:$0xff] }
  0x29   : > { %515 = vmatpush.msra.mxu1 %v418_v37  ;;  %638 = vmatpush.msra.mxu3 %v1783_v40  ;;  %v415_v16 = vld [vmem:[%s2356_s27 + $0x20] sm:$0xf]  ;;  %v1799_v18 = vld [vmem:[%s3453_s1 + $0x198] sm:$0xff]  ;;  %v1798_v21 = vld [vmem:[%s3453_s1 + $0x190] sm:$0xff]  ;;  %v675_v30 = vsel %vm672_vm4, %v673_v28, %v674_v29  ;;  %v677_v32 = vsel %vm672_vm4, %v674_v29, %v676_v31  ;;  %v678_v33 = vrot.slane %v414_v5, 4  ;;  %s2096_s27 = sshra.s32 %s1685_s17, 4  ;;  %s2097_s27 = int_to_ptr.hbm [resolvable:$true] %s2096_s27 }
  0x2a   : > { %575 = vmatpush.msra.mxu2 %v1766_v39  ;;  %479 = vmatpush.msra.mxu0 %v1745_v41  ;;  %v453_v13 = vsel %vm446_vm0, %v450_v61, %v452_v8  ;;  %v551_v14 = vsel %vm544_vm1, %v548_v63, %v550_v9  ;;  %v615_v17 = vsel %vm608_vm2, %v612_v0, %v614_v11  ;;  %v454_v19 = vrot.slane %v415_v16, 1  ;;  %v1797_v23 = vld [vmem:[%s3453_s1 + $0x188] sm:$0xff]  ;;  %v1796_v26 = vld [vmem:[%s3453_s1 + $0x180] sm:$0xff]  ;;  %v766_v41 = vld [vmem:[%s3455_s3 + $0x58] sm:$0xff]  ;;  %s2098_s18 = scalar_lea.hbm %s2097_s27, 1  ;;  %p2103_p0 = scmp.lt.s32.totalorder %s2097_s27, %s3464_s12 }
  0x2b   : > { %516 = vmatpush.msra.mxu1 %v417_v42  ;;  %639 = vmatpush.msra.mxu3 %v1782_v46  ;;  %v552_v20 = vrot.slane %v415_v16, 2  ;;  %v616_v22 = vrot.slane %v415_v16, 3  ;;  %v679_v34 = vsel %vm672_vm4, %v676_v31, %v678_v33  ;;  %v680_v36 = vrot.slane %v415_v16, 4  ;;  %v768_v39 = vld [vmem:[%s3455_s3 + $0x68] sm:$0xff]  ;;  %v767_v40 = vld [vmem:[%s3455_s3 + $0x60] sm:$0xff]  ;;  %v765_v42 = vld [vmem:[%s3455_s3 + $0x50] sm:$0xff]  ;;  %p2099_p11 = scmp.ne.s32.totalorder %s2097_s27, %s2098_s18  ;;  %p2104_p1 = scmp.lt.s32.totalorder %s2102_s23, %s2098_s18 }
  0x2c   : > { %576 = vmatpush.msra.mxu2 %v1765_v45  ;;  %480 = vmatpush.msra.mxu0 %v1744_v49  ;;  %v455_v24 = vsel %vm446_vm0, %v452_v8, %v454_v19  ;;  %v764_v43 = vld [vmem:[%s3455_s3 + $0x48] sm:$0xff]  ;;  %v763_v44 = vld [vmem:[%s3455_s3 + $0x40] sm:$0xff]  ;;  %v762_v45 = vld [vmem:[%s3455_s3 + $0x38] sm:$0xff] }
  0x2d   : > { %517 = vmatpush.msra.mxu1 %v416_v50  ;;  %640 = vmatpush.msra.mxu3 %v1781_v54  ;;  %v553_v25 = vsel %vm544_vm1, %v550_v9, %v552_v20  ;;  %v617_v27 = vsel %vm608_vm2, %v614_v11, %v616_v22  ;;  %v681_v37 = vsel %vm672_vm4, %v678_v33, %v680_v36  ;;  %v761_v47 = vld [vmem:[%s3455_s3 + $0x30] sm:$0xff]  ;;  %v760_v48 = vld [vmem:[%s3455_s3 + $0x28] sm:$0xff]  ;;  %v759_v49 = vld [vmem:[%s3455_s3 + $0x20] sm:$0xff]  ;;  %p2100_p12 = pnand %p2099_p11, %p2249_p5  ;;  %p2105_p2 = por %p2104_p1, %p2103_p0 }
  0x2e   : > { %577 = vmatpush.msra.mxu2 %v1764_v53  ;;  %1756 = vmatmul.msk.f32.vlgmr.msra.gmra.mxu0 %vm456_vm3, %v449_v55  ;;  %v758_v50 = vld [vmem:[%s3455_s3 + $0x18] sm:$0xff]  ;;  %v757_v52 = vld [vmem:[%s3455_s3 + $0x10] sm:$0xff]  ;;  %v756_v53 = vld [vmem:[%s3455_s3 + $0x8] sm:$0xff] }
  0x2f   : > { %1760 = vmatmul.msk.f32.vlgmr.msra.gmra.mxu1 %vm456_vm3, %v2377_v35  ;;  %1776 = vmatmul.msk.f32.vlgmr.msra.gmra.mxu2 %vm456_vm3, %v547_v56  ;;  %v770_v35 = vld [vmem:[%s3455_s3 + $0x78] sm:$0xff]  ;;  %v755_v54 = vld [vmem:[%s3455_s3] sm:$0xff]  ;;  %p2101_p13 = pneg %p2100_p12 }
  0x30   : > { %641 = vmatpush.msra.mxu3 %v1780_v57  ;;  %694 = vmatpush.msrb.mxu0 %v1807_v60 }
  0x31   : > { %1792 = vmatmul.msk.f32.vlgmr.msra.gmra.mxu3 %vm456_vm3, %v611_v59  ;;  %771 = vmatpush.msrb.mxu1 %v770_v35  ;;  %p2106_p3 = pnand %p2105_p2, %p2101_p13 }
  0x32   : > { %695 = vmatpush.msrb.mxu0 %v1806_v62 }
  0x34   : > { %696 = vmatpush.msrb.mxu0 %v1805_v1  ;;  %v2080_v1 = vld [vmem:[%s3454_s2] ss:$0 sm:$0xff] }
  0x36   : > { %1757 = vmatmul.msk.f32.gmra.mxu0 %vm456_vm3, %v451_v2 }
  0x37   : > { %1761 = vmatmul.msk.f32.gmra.mxu1 %vm456_vm3, %v2386_v38  ;;  %1777 = vmatmul.msk.f32.gmra.mxu2 %vm456_vm3, %v549_v3  ;;  %v769_v38 = vld [vmem:[%s3455_s3 + $0x70] sm:$0xff] }
  0x38   : > { %697 = vmatpush.msrb.mxu0 %v1804_v4  ;;  %772 = vmatpush.msrb.mxu1 %v769_v38 }
  0x39   : > { %1793 = vmatmul.msk.f32.gmra.mxu3 %vm456_vm3, %v613_v6 }
  0x3a   : > { %698 = vmatpush.msrb.mxu0 %v1803_v7  ;;  %773 = vmatpush.msrb.mxu1 %v768_v39 }
  0x3c   : > { %699 = vmatpush.msrb.mxu0 %v1802_v10  ;;  %774 = vmatpush.msrb.mxu1 %v767_v40 }
  0x3e   : > { %700 = vmatpush.msrb.mxu0 %v1801_v12  ;;  %775 = vmatpush.msrb.mxu1 %v766_v41 }
  0x3f   : > { %1758 = vmatmul.msk.f32.gmra.mxu0 %vm456_vm3, %v453_v13  ;;  %1762 = vmatmul.msk.f32.gmra.mxu1 %vm456_vm3, %v2430_v58 }
  0x40   : > { %1778 = vmatmul.msk.f32.gmra.mxu2 %vm456_vm3, %v551_v14  ;;  %701 = vmatpush.msrb.mxu0 %v1800_v15 }
  0x41   : > { %1794 = vmatmul.msk.f32.gmra.mxu3 %vm456_vm3, %v615_v17  ;;  %776 = vmatpush.msrb.mxu1 %v765_v42 }
  0x42   : > { %702 = vmatpush.msrb.mxu0 %v1799_v18 }
  0x43   : > { %777 = vmatpush.msrb.mxu1 %v764_v43 }
  0x44   : > { %703 = vmatpush.msrb.mxu0 %v1798_v21 }
  0x45   : > { %778 = vmatpush.msrb.mxu1 %v763_v44 }
  0x46   : > { %704 = vmatpush.msrb.mxu0 %v1797_v23 }
  0x47   : > { %1759 = vmatmul.msk.f32.gmra.mxu0 %vm456_vm3, %v455_v24  ;;  %1763 = vmatmul.msk.f32.gmra.mxu1 %vm456_vm3, %v414_v5 }
  0x48   : > { %1779 = vmatmul.msk.f32.gmra.mxu2 %vm456_vm3, %v553_v25  ;;  %705 = vmatpush.msrb.mxu0 %v1796_v26 }
  0x49   : > { %1795 = vmatmul.msk.f32.gmra.mxu3 %vm456_vm3, %v617_v27  ;;  %779 = vmatpush.msrb.mxu1 %v762_v45 }
  0x4b   : > { %780 = vmatpush.msrb.mxu1 %v761_v47 }
  0x4d   : > { %781 = vmatpush.msrb.mxu1 %v760_v48 }
  0x4f   : > { %1808 = vmatmul.msk.f32.vlgmr.msrb.gmra.mxu0 %vm456_vm3, %v675_v30  ;;  %782 = vmatpush.msrb.mxu1 %v759_v49 }
  0x51   : > { %783 = vmatpush.msrb.mxu1 %v758_v50 }
  0x53   : > { %784 = vmatpush.msrb.mxu1 %v757_v52 }
  0x55   : > { %785 = vmatpush.msrb.mxu1 %v756_v53 }
  0x57   : > { %1809 = vmatmul.msk.f32.gmra.mxu0 %vm456_vm3, %v677_v32  ;;  %786 = vmatpush.msrb.mxu1 %v755_v54  ;;  %v1834_v54 = vld [vmem:[%s3458_s6 + $0xf8] sm:$0xff] }
  0x58   : > { %924 = vmatpush.msra.mxu0 %v1834_v54  ;;  %v1886_v54 = vld [vmem:[%s3458_s6 + $0x268] sm:$0xff] }
  0x5f   : > { %1810 = vmatmul.msk.f32.gmra.mxu0 %vm456_vm3, %v679_v34 }
  0x67   : > { %1811 = vmatmul.msk.f32.gmra.mxu0 %vm456_vm3, %v681_v37 }
  0xab   : > { %v482_v46 = vpop.f32.mrf.mxu0 }
  0xac   : > { %v519_v55 = vpop.f32.mrf.mxu1 }
  0xad   : > { %v520_v60 = vadd.f32 %v519_v55, %v482_v46  ;;  %v1833_v55 = vld [vmem:[%s3458_s6 + $0xf0] sm:$0xff] }
  0xae   : > { %925 = vmatpush.msra.mxu0 %v1833_v55  ;;  %v1867_v55 = vld [vmem:[%s3458_s6 + $0x1e0] sm:$0xff] }
  0xb2   : > { %v579_v57 = vpop.f32.mrf.mxu2 }
  0xb3   : > { %v485_v51 = vpop.f32.mrf.mxu0  ;;  %v591_v62 = vadd.f32 %v579_v57, %v520_v60  ;;  %v751_v57 = vld [vmem:[%s3456_s4] sm:$0xff]  ;;  %v1850_v60 = vld [vmem:[%s3458_s6 + $0x168] sm:$0xff] }
  0xb4   : > { %v643_v58 = vpop.f32.mrf.mxu3  ;;  %v522_v61 = vpop.f32.mrf.mxu1 }
  0xb5   : > { %v655_v0 = vadd.f32 %v643_v58, %v591_v62  ;;  %v523_v4 = vadd.f32 %v522_v61, %v485_v51  ;;  %v1852_v58 = vld [vmem:[%s3458_s6 + $0x178] sm:$0xff]  ;;  %v752_v61 = vld [vmem:[%s3456_s4 + $0x8] sm:$0xff]  ;;  %v753_v62 = vld [vmem:[%s3456_s4 + $0x10] sm:$0xff] }
  0xba   : > { %v582_v63 = vpop.f32.mrf.mxu2 }
  0xbb   : > { %v592_v6 = vadd.f32 %v582_v63, %v523_v4  ;;  %v754_v63 = vld [vmem:[%s3456_s4 + $0x18] sm:$0xff]  ;;  %v1829_v4 = vld [vmem:[%s3458_s6 + $0xd0] sm:$0xff] }
  0xbc   : > { %v488_v56 = vpop.f32.mrf.mxu0  ;;  %v646_v2 = vpop.f32.mrf.mxu3 }
  0xbd   : > { %v525_v8 = vpop.f32.mrf.mxu1  ;;  %v656_v11 = vadd.f32 %v646_v2, %v592_v6  ;;  %v1830_v2 = vld [vmem:[%s3458_s6 + $0xd8] sm:$0xff]  ;;  %v1828_v6 = vld [vmem:[%s3458_s6 + $0xc8] sm:$0xff] }
  0xbe   : > { %v526_v15 = vadd.f32 %v525_v8, %v488_v56  ;;  %v1832_v56 = vld [vmem:[%s3458_s6 + $0xe8] sm:$0xff]  ;;  %v1827_v8 = vld [vmem:[%s3458_s6 + $0xc0] sm:$0xff] }
  0xbf   : > { %926 = vmatpush.msra.mxu0 %v1832_v56  ;;  %v1885_v56 = vld [vmem:[%s3458_s6 + $0x260] sm:$0xff] }
  0xc3   : > { %v585_v10 = vpop.f32.mrf.mxu2 }
  0xc4   : > { %v491_v59 = vpop.f32.mrf.mxu0  ;;  %v649_v18 = vpop.f32.mrf.mxu3  ;;  %v593_v19 = vadd.f32 %v585_v10, %v526_v15  ;;  %v1826_v10 = vld [vmem:[%s3458_s6 + $0xb8] sm:$0xff]  ;;  %v1842_v15 = vld [vmem:[%s3458_s6 + $0x128] sm:$0xff] }
  0xc5   : > { %v528_v23 = vpop.f32.mrf.mxu1 }
  0xc6   : > { %v657_v24 = vadd.f32 %v649_v18, %v593_v19  ;;  %v529_v29 = vadd.f32 %v528_v23, %v491_v59  ;;  %v1851_v59 = vld [vmem:[%s3458_s6 + $0x170] sm:$0xff]  ;;  %v1822_v18 = vld [vmem:[%s3458_s6 + $0x98] sm:$0xff]  ;;  %v1838_v23 = vld [vmem:[%s3458_s6 + $0x108] sm:$0xff] }
  0xc7   : > { %v1840_v19 = vld [vmem:[%s3458_s6 + $0x118] sm:$0xff] }
  0xcb   : > { %v588_v27 = vpop.f32.mrf.mxu2 }
  0xcc   : > { %v707_v3 = vpop.f32.mrf.mxu0  ;;  %v594_v32 = vadd.f32 %v588_v27, %v529_v29  ;;  %v652_v36 = vpop.f32.mrf.mxu3  ;;  %v880_v29 = vld [vmem:[%s3458_s6 + $0x70] sm:$0xff] }
  0xcd   : > { %v719_v5 = vadd.f32 %v707_v3, %v655_v0  ;;  %v1831_v0 = vld [vmem:[%s3458_s6 + $0xe0] sm:$0xff]  ;;  %v1848_v3 = vld [vmem:[%s3458_s6 + $0x158] sm:$0xff] }
  0xce   : > { %v658_v35 = vadd.f32 %v652_v36, %v594_v32  ;;  %927 = vmatpush.msra.mxu0 %v1831_v0  ;;  %v878_v32 = vld [vmem:[%s3458_s6 + $0x60] sm:$0xff]  ;;  %v1862_v0 = vld [vmem:[%s3458_s6 + $0x1b8] sm:$0xff] }
  0xcf   : > { %v727_v7 = vadd.f32 %v2080_v1, %v719_v5  ;;  %v1847_v5 = vld [vmem:[%s3458_s6 + $0x150] sm:$0xff] }
  0xd0   : > { %928 = vmatpush.msra.mxu0 %v1830_v2  ;;  %v1861_v2 = vld [vmem:[%s3458_s6 + $0x1b0] sm:$0xff] }
  0xd1   : > { %v731_v9 = vmul.f32 0.117071, %v727_v7  ;;  %v739_v13 = vmul.f32 0.5, %v727_v7 }
  0xd2   : > { %929 = vmatpush.msra.mxu0 %v1829_v4  ;;  %v1871_v4 = vld [vmem:[%s3457_s5 + $0x20] sm:$0xff] }
  0xd3   : > { %v735_v12 = vmul.f32 %v731_v9, %v727_v7  ;;  %v1846_v7 = vld [vmem:[%s3458_s6 + $0x148] sm:$0xff]  ;;  %v1845_v9 = vld [vmem:[%s3458_s6 + $0x140] sm:$0xff] }
  0xd4   : > { %v710_v14 = vpop.f32.mrf.mxu0  ;;  %930 = vmatpush.msra.mxu0 %v1828_v6  ;;  %v1882_v6 = vld [vmem:[%s3458_s6 + $0x248] sm:$0xff] }
  0xd5   : > { %v720_v16 = vadd.f32 %v710_v14, %v656_v11  ;;  %v743_v17 = vadd.f32 %v739_v13, %v735_v12  ;;  %v1844_v11 = vld [vmem:[%s3458_s6 + $0x138] sm:$0xff]  ;;  %v1825_v12 = vld [vmem:[%s3458_s6 + $0xb0] sm:$0xff]  ;;  %v1824_v14 = vld [vmem:[%s3458_s6 + $0xa8] sm:$0xff] }
  0xd6   : > { %931 = vmatpush.msra.mxu0 %v1827_v8  ;;  %v1843_v13 = vld [vmem:[%s3458_s6 + $0x130] sm:$0xff]  ;;  %v1881_v8 = vld [vmem:[%s3458_s6 + $0x240] sm:$0xff] }
  0xd7   : > { %v728_v20 = vadd.f32 %v2080_v1, %v720_v16  ;;  %v747_v21 = vadd.f32 0.375373, %v743_v17  ;;  %v1823_v16 = vld [vmem:[%s3458_s6 + $0xa0] sm:$0xff] }
  0xd8   : > { %932 = vmatpush.msra.mxu0 %v1826_v10  ;;  %v1841_v17 = vld [vmem:[%s3458_s6 + $0x120] sm:$0xff]  ;;  %v1880_v10 = vld [vmem:[%s3458_s6 + $0x238] sm:$0xff] }
  0xd9   : > { %787 = vmatmul.f32.vlgmr.msrb.gmra.mxu1 %v747_v21  ;;  %v732_v22 = vmul.f32 0.117071, %v728_v20  ;;  %v740_v26 = vmul.f32 0.5, %v728_v20  ;;  %v1839_v21 = vld [vmem:[%s3458_s6 + $0x110] sm:$0xff] }
  0xda   : > { %933 = vmatpush.msra.mxu0 %v1825_v12  ;;  %v1879_v12 = vld [vmem:[%s3458_s6 + $0x230] sm:$0xff] }
  0xdb   : > { %v736_v25 = vmul.f32 %v732_v22, %v728_v20  ;;  %v1821_v20 = vld [vmem:[%s3458_s6 + $0x90] sm:$0xff]  ;;  %v1820_v22 = vld [vmem:[%s3458_s6 + $0x88] sm:$0xff] }
  0xdc   : > { %v713_v28 = vpop.f32.mrf.mxu0  ;;  %934 = vmatpush.msra.mxu0 %v1824_v14  ;;  %v1878_v14 = vld [vmem:[%s3458_s6 + $0x228] sm:$0xff] }
  0xdd   : > { %v721_v30 = vadd.f32 %v713_v28, %v657_v24  ;;  %v744_v31 = vadd.f32 %v740_v26, %v736_v25  ;;  %v1819_v24 = vld [vmem:[%s3458_s6 + $0x80] sm:$0xff]  ;;  %v881_v28 = vld [vmem:[%s3458_s6 + $0x78] sm:$0xff] }
  0xde   : > { %935 = vmatpush.msra.mxu0 %v1823_v16  ;;  %v1837_v25 = vld [vmem:[%s3458_s6 + $0x100] sm:$0xff]  ;;  %944 = vmatpush.msra.mxu1 %v881_v28  ;;  %v1902_v28 = vld [vmem:[%s3458_s6 + $0x2d8] sm:$0xff] }
  0xdf   : > { %v729_v33 = vadd.f32 %v2080_v1, %v721_v30  ;;  %v748_v34 = vadd.f32 0.375373, %v744_v31  ;;  %v879_v31 = vld [vmem:[%s3458_s6 + $0x68] sm:$0xff]  ;;  %v1855_v16 = vld [vmem:[%s3458_s6 + $0x180] sm:$0xff] }
  0xe0   : > { %936 = vmatpush.msra.mxu0 %v1822_v18  ;;  %945 = vmatpush.msra.mxu1 %v880_v29  ;;  %v1876_v18 = vld [vmem:[%s3458_s6 + $0x218] sm:$0xff] }
  0xe1   : > { %790 = vmatmul.f32.gmra.mxu1 %v748_v34  ;;  %v733_v37 = vmul.f32 0.117071, %v729_v33  ;;  %v741_v39 = vmul.f32 0.5, %v729_v33  ;;  %v876_v34 = vld [vmem:[%s3458_s6 + $0x50] sm:$0xff] }
  0xe2   : > { %937 = vmatpush.msra.mxu0 %v1821_v20  ;;  %946 = vmatpush.msra.mxu1 %v879_v31  ;;  %v1874_v20 = vld [vmem:[%s3458_s6 + $0x208] sm:$0xff]  ;;  %v1901_v31 = vld [vmem:[%s3458_s6 + $0x2d0] sm:$0xff] }
  0xe3   : > { %v737_v38 = vmul.f32 %v733_v37, %v729_v33  ;;  %v877_v33 = vld [vmem:[%s3458_s6 + $0x58] sm:$0xff]  ;;  %v842_v37 = vld [vmem:[%s3457_s5] sm:$0xff] }
  0xe4   : > { %v716_v40 = vpop.f32.mrf.mxu0  ;;  %938 = vmatpush.msra.mxu0 %v1820_v22  ;;  %947 = vmatpush.msra.mxu1 %v878_v32  ;;  %v1906_v22 = vld [vmem:[%s3458_s6 + $0x2f8] sm:$0xff]  ;;  %v1900_v32 = vld [vmem:[%s3458_s6 + $0x2c8] sm:$0xff] }
  0xe5   : > { %v722_v41 = vadd.f32 %v716_v40, %v658_v35  ;;  %v745_v42 = vadd.f32 %v741_v39, %v737_v38  ;;  %v1817_v35 = vld [vmem:[%s3457_s5 + $0x8] sm:$0xff]  ;;  %v874_v39 = vld [vmem:[%s3458_s6 + $0x40] sm:$0xff]  ;;  %v873_v40 = vld [vmem:[%s3458_s6 + $0x38] sm:$0xff] }
  0xe6   : > { %939 = vmatpush.msra.mxu0 %v1819_v24  ;;  %948 = vmatpush.msra.mxu1 %v877_v33  ;;  %v875_v38 = vld [vmem:[%s3458_s6 + $0x48] sm:$0xff]  ;;  %v1899_v33 = vld [vmem:[%s3458_s6 + $0x2c0] sm:$0xff] }
  0xe7   : > { %v730_v43 = vadd.f32 %v2080_v1, %v722_v41  ;;  %v749_v44 = vadd.f32 0.375373, %v745_v42  ;;  %v1849_v1 = vld [vmem:[%s3458_s6 + $0x160] sm:$0xff]  ;;  %v872_v41 = vld [vmem:[%s3458_s6 + $0x30] sm:$0xff]  ;;  %v871_v42 = vld [vmem:[%s3458_s6 + $0x28] sm:$0xff] }
  0xe8   : > { %949 = vmatpush.msra.mxu1 %v876_v34  ;;  %v1904_v24 = vld [vmem:[%s3458_s6 + $0x2e8] sm:$0xff]  ;;  %v1898_v34 = vld [vmem:[%s3458_s6 + $0x2b8] sm:$0xff] }
  0xe9   : > { %793 = vmatmul.f32.gmra.mxu1 %v749_v44  ;;  %v734_v45 = vmul.f32 0.117071, %v730_v43  ;;  %v742_v47 = vmul.f32 0.5, %v730_v43  ;;  %v869_v44 = vld [vmem:[%s3458_s6 + $0x18] sm:$0xff] }
  0xea   : > { %950 = vmatpush.msra.mxu1 %v875_v38  ;;  %v1896_v38 = vld [vmem:[%s3458_s6 + $0x2a8] sm:$0xff] }
  0xeb   : > { %v738_v46 = vmul.f32 %v734_v45, %v730_v43  ;;  %v870_v43 = vld [vmem:[%s3458_s6 + $0x20] sm:$0xff]  ;;  %v868_v45 = vld [vmem:[%s3458_s6 + $0x10] sm:$0xff] }
  0xec   : > { %951 = vmatpush.msra.mxu1 %v874_v39  ;;  %v1889_v39 = vld [vmem:[%s3457_s5 + $0x28] sm:$0xff] }
  0xed   : > { %v746_v48 = vadd.f32 %v742_v47, %v738_v46  ;;  %v867_v46 = vld [vmem:[%s3458_s6 + $0x8] sm:$0xff]  ;;  %v866_v47 = vld [vmem:[%s3458_s6] sm:$0xff] }
  0xee   : > { %952 = vmatpush.msra.mxu1 %v873_v40  ;;  %v1924_v40 = vld [vmem:[%s3458_s6 + $0x378] sm:$0xff] }
  0xef   : > { %v750_v49 = vadd.f32 0.375373, %v746_v48  ;;  %v1853_v48 = vld [vmem:[%s3457_s5 + $0x18] sm:$0xff] }
  0xf0   : > { %953 = vmatpush.msra.mxu1 %v872_v41  ;;  %v1921_v41 = vld [vmem:[%s3458_s6 + $0x360] sm:$0xff] }
  0xf1   : > { %796 = vmatmul.f32.gmra.mxu1 %v750_v49  ;;  %v1870_v49 = vld [vmem:[%s3458_s6 + $0x1f8] sm:$0xff] }
  0xf2   : > { %954 = vmatpush.msra.mxu1 %v871_v42  ;;  %v1920_v42 = vld [vmem:[%s3458_s6 + $0x358] sm:$0xff] }
  0xf4   : > { %955 = vmatpush.msra.mxu1 %v870_v43  ;;  %v1919_v43 = vld [vmem:[%s3458_s6 + $0x350] sm:$0xff] }
  0xf6   : > { %956 = vmatpush.msra.mxu1 %v869_v44  ;;  %v1918_v44 = vld [vmem:[%s3458_s6 + $0x348] sm:$0xff] }
  0xf8   : > { %957 = vmatpush.msra.mxu1 %v868_v45  ;;  %v1895_v45 = vld [vmem:[%s3458_s6 + $0x2a0] sm:$0xff] }
  0xfa   : > { %958 = vmatpush.msra.mxu1 %v867_v46  ;;  %v1917_v46 = vld [vmem:[%s3458_s6 + $0x340] sm:$0xff] }
  0xfc   : > { %959 = vmatpush.msra.mxu1 %v866_v47  ;;  %v1894_v47 = vld [vmem:[%s3458_s6 + $0x298] sm:$0xff] }
 0x156   : > { %v788_v50 = vpop.f32.mrf.mxu1 }
 0x15e   : > { %v791_v51 = vpop.f32.mrf.mxu1 }
 0x166   : > { %v794_v52 = vpop.f32.mrf.mxu1 }
 0x16e   : > { %v797_v53 = vpop.f32.mrf.mxu1 }
 0x16f   : > { %825 = vmatpush.msrb.mxu2 %v797_v53  ;;  %v1887_v53 = vld [vmem:[%s3458_s6 + $0x270] sm:$0xff] }
 0x171   : > { %826 = vmatpush.msrb.mxu2 %v794_v52  ;;  %v1868_v52 = vld [vmem:[%s3458_s6 + $0x1e8] sm:$0xff] }
 0x173   : > { %827 = vmatpush.msrb.mxu2 %v791_v51  ;;  %v1888_v51 = vld [vmem:[%s3458_s6 + $0x278] sm:$0xff] }
 0x174   : > { %1132 = vmatpush.msrb.mxu1 %v1888_v51  ;;  %v1892_v51 = vld [vmem:[%s3458_s6 + $0x288] sm:$0xff] }
 0x175   : > { %828 = vmatpush.msrb.mxu2 %v788_v50  ;;  %v1869_v50 = vld [vmem:[%s3458_s6 + $0x1f0] sm:$0xff] }
 0x176   : > { %1812 = vmatmul.msk.f32.vlgmr.msrb.gmra.mxu2 %vm800_vm5, %v751_v57  ;;  %1133 = vmatpush.msrb.mxu1 %v1887_v53  ;;  %v1891_v53 = vld [vmem:[%s3458_s6 + $0x280] sm:$0xff] }
 0x177   : > { %1006 = vmatpush.msra.mxu2 %v1852_v58  ;;  %v1866_v58 = vld [vmem:[%s3458_s6 + $0x1d8] sm:$0xff] }
 0x178   : > { %1134 = vmatpush.msrb.mxu1 %v1886_v54  ;;  %v1913_v54 = vld [vmem:[%s3458_s6 + $0x320] sm:$0xff] }
 0x179   : > { %1007 = vmatpush.msra.mxu2 %v1851_v59  ;;  %v1884_v59 = vld [vmem:[%s3458_s6 + $0x258] sm:$0xff] }
 0x17a   : > { %1135 = vmatpush.msrb.mxu1 %v1885_v56  ;;  %v1911_v56 = vld [vmem:[%s3458_s6 + $0x310] sm:$0xff] }
 0x17b   : > { %1008 = vmatpush.msra.mxu2 %v1850_v60  ;;  %v1865_v60 = vld [vmem:[%s3458_s6 + $0x1d0] sm:$0xff] }
 0x17c   : > { %1136 = vmatpush.msrb.mxu1 %v1884_v59  ;;  %v1305_v59 = vld [vmem:[%s3460_s8 + $0x78] sm:$0xff] }
 0x17d   : > { %1009 = vmatpush.msra.mxu2 %v1849_v1 }
 0x17e   : > { %1813 = vmatmul.msk.f32.gmra.mxu2 %vm800_vm5, %v752_v61  ;;  %v1883_v61 = vld [vmem:[%s3458_s6 + $0x250] sm:$0xff] }
 0x17f   : > { %1010 = vmatpush.msra.mxu2 %v1848_v3  ;;  %1137 = vmatpush.msrb.mxu1 %v1883_v61  ;;  %v1835_v3 = vld [vmem:[%s3457_s5 + $0x10] sm:$0xff] }
 0x181   : > { %1011 = vmatpush.msra.mxu2 %v1847_v5  ;;  %v1860_v5 = vld [vmem:[%s3458_s6 + $0x1a8] sm:$0xff]  ;;  %1138 = vmatpush.msrb.mxu1 %v1882_v6  ;;  %v1300_v6 = vld [vmem:[%s3460_s8 + $0x50] sm:$0xff] }
 0x183   : > { %1012 = vmatpush.msra.mxu2 %v1846_v7  ;;  %v1859_v7 = vld [vmem:[%s3458_s6 + $0x1a0] sm:$0xff]  ;;  %1139 = vmatpush.msrb.mxu1 %v1881_v8 }
 0x184   : > { %v1298_v8 = vld [vmem:[%s3460_s8 + $0x40] sm:$0xff] }
 0x185   : > { %1013 = vmatpush.msra.mxu2 %v1845_v9  ;;  %v1858_v9 = vld [vmem:[%s3458_s6 + $0x198] sm:$0xff]  ;;  %1140 = vmatpush.msrb.mxu1 %v1880_v10  ;;  %v1296_v10 = vld [vmem:[%s3460_s8 + $0x30] sm:$0xff] }
 0x186   : > { %1814 = vmatmul.msk.f32.gmra.mxu2 %vm800_vm5, %v753_v62  ;;  %v1864_v62 = vld [vmem:[%s3458_s6 + $0x1c8] sm:$0xff] }
 0x187   : > { %1014 = vmatpush.msra.mxu2 %v1844_v11  ;;  %v1857_v11 = vld [vmem:[%s3458_s6 + $0x190] sm:$0xff]  ;;  %1141 = vmatpush.msrb.mxu1 %v1879_v12  ;;  %v1294_v12 = vld [vmem:[%s3460_s8 + $0x20] sm:$0xff] }
 0x189   : > { %1015 = vmatpush.msra.mxu2 %v1843_v13  ;;  %v1856_v13 = vld [vmem:[%s3458_s6 + $0x188] sm:$0xff]  ;;  %1142 = vmatpush.msrb.mxu1 %v1878_v14  ;;  %v1292_v14 = vld [vmem:[%s3460_s8 + $0x10] sm:$0xff] }
 0x18b   : > { %1016 = vmatpush.msra.mxu2 %v1842_v15 }
 0x18d   : > { %1017 = vmatpush.msra.mxu2 %v1841_v17  ;;  %v1877_v17 = vld [vmem:[%s3458_s6 + $0x220] sm:$0xff] }
 0x18e   : > { %1815 = vmatmul.msk.f32.gmra.mxu2 %vm800_vm5, %v754_v63  ;;  %v1863_v63 = vld [vmem:[%s3458_s6 + $0x1c0] sm:$0xff]  ;;  %1143 = vmatpush.msrb.mxu1 %v1877_v17 }
 0x18f   : > { %1018 = vmatpush.msra.mxu2 %v1840_v19  ;;  %v1875_v19 = vld [vmem:[%s3458_s6 + $0x210] sm:$0xff] }
 0x190   : > { %1144 = vmatpush.msrb.mxu1 %v1876_v18 }
 0x191   : > { %1019 = vmatpush.msra.mxu2 %v1839_v21  ;;  %v1873_v21 = vld [vmem:[%s3458_s6 + $0x200] sm:$0xff] }
 0x192   : > { %1145 = vmatpush.msrb.mxu1 %v1875_v19 }
 0x193   : > { %1020 = vmatpush.msra.mxu2 %v1838_v23  ;;  %v1905_v23 = vld [vmem:[%s3458_s6 + $0x2f0] sm:$0xff] }
 0x194   : > { %1146 = vmatpush.msrb.mxu1 %v1874_v20 }
 0x195   : > { %1021 = vmatpush.msra.mxu2 %v1837_v25  ;;  %v1903_v25 = vld [vmem:[%s3458_s6 + $0x2e0] sm:$0xff] }
 0x196   : > { %1147 = vmatpush.msrb.mxu1 %v1873_v21 }
 0x1f9   : > { %v2672_v26 = vpop.f32.mrf.mxu2 }
 0x201   : > { %v2674_v27 = vpop.f32.mrf.mxu2 }
 0x209   : > { %v2682_v30 = vpop.f32.mrf.mxu2 }
 0x211   : > { %v2696_v36 = vpop.f32.mrf.mxu2 }
 0x212   : > { %858 = vmatpush.msrb.mxu3 %v2696_v36  ;;  %981 = vmatpush.msrb.mxu0 %v2696_v36 }
 0x213   : > { %1170 = vmatpush.msrb.mxu2 %v2696_v36 }
 0x214   : > { %859 = vmatpush.msrb.mxu3 %v2682_v30  ;;  %982 = vmatpush.msrb.mxu0 %v2682_v30 }
 0x215   : > { %1171 = vmatpush.msrb.mxu2 %v2682_v30 }
 0x216   : > { %860 = vmatpush.msrb.mxu3 %v2674_v27  ;;  %983 = vmatpush.msrb.mxu0 %v2674_v27 }
 0x217   : > { %1172 = vmatpush.msrb.mxu2 %v2674_v27 }
 0x218   : > { %861 = vmatpush.msrb.mxu3 %v2672_v26  ;;  %984 = vmatpush.msrb.mxu0 %v2672_v26 }
 0x219   : > { %1173 = vmatpush.msrb.mxu2 %v2672_v26  ;;  %1816 = vmatmul.msk.f32.vlgmr.msrb.gmra.mxu3 %vm800_vm5, %v842_v37 }
 0x21a   : > { %899 = vmatpush.msra.mxu3 %v2696_v36 }
 0x21c   : > { %900 = vmatpush.msra.mxu3 %v2682_v30 }
 0x21e   : > { %901 = vmatpush.msra.mxu3 %v2674_v27 }
 0x220   : > { %902 = vmatpush.msra.mxu3 %v2672_v26 }
 0x221   : > { %1818 = vmatmul.msk.f32.vlgmr.msra.gmra.mxu3 %vm800_vm5, %v1817_v35  ;;  %v1897_v35 = vld [vmem:[%s3458_s6 + $0x2b0] sm:$0xff] }
 0x222   : > { %1044 = vmatpush.msrb.mxu3 %v2696_v36 }
 0x224   : > { %1045 = vmatpush.msrb.mxu3 %v2682_v30 }
 0x226   : > { %1046 = vmatpush.msrb.mxu3 %v2674_v27 }
 0x228   : > { %1047 = vmatpush.msrb.mxu3 %v2672_v26 }
 0x229   : > { %1854 = vmatmul.msk.f32.vlgmr.msrb.gmra.mxu3 %vm800_vm5, %v1853_v48  ;;  %v1916_v48 = vld [vmem:[%s3458_s6 + $0x338] sm:$0xff] }
 0x22a   : > { %1069 = vmatpush.msra.mxu3 %v1870_v49  ;;  %v1893_v49 = vld [vmem:[%s3458_s6 + $0x290] sm:$0xff] }
 0x22c   : > { %1070 = vmatpush.msra.mxu3 %v1869_v50  ;;  %v1915_v50 = vld [vmem:[%s3458_s6 + $0x330] sm:$0xff] }
 0x22e   : > { %1071 = vmatpush.msra.mxu3 %v1868_v52  ;;  %v1914_v52 = vld [vmem:[%s3458_s6 + $0x328] sm:$0xff] }
 0x230   : > { %1072 = vmatpush.msra.mxu3 %v1867_v55  ;;  %v1912_v55 = vld [vmem:[%s3458_s6 + $0x318] sm:$0xff] }
 0x232   : > { %1073 = vmatpush.msra.mxu3 %v1866_v58  ;;  %v1909_v58 = vld [vmem:[%s3458_s6 + $0x300] sm:$0xff] }
 0x234   : > { %1074 = vmatpush.msra.mxu3 %v1865_v60  ;;  %v1304_v60 = vld [vmem:[%s3460_s8 + $0x70] sm:$0xff] }
 0x236   : > { %1075 = vmatpush.msra.mxu3 %v1864_v62 }
 0x238   : > { %1076 = vmatpush.msra.mxu3 %v1863_v63 }
 0x23a   : > { %1077 = vmatpush.msra.mxu3 %v1862_v0 }
 0x23c   : > { %1078 = vmatpush.msra.mxu3 %v1861_v2 }
 0x23e   : > { %1079 = vmatpush.msra.mxu3 %v1860_v5  ;;  %v1301_v5 = vld [vmem:[%s3460_s8 + $0x58] sm:$0xff] }
 0x240   : > { %1080 = vmatpush.msra.mxu3 %v1859_v7  ;;  %v1299_v7 = vld [vmem:[%s3460_s8 + $0x48] sm:$0xff] }
 0x242   : > { %1081 = vmatpush.msra.mxu3 %v1858_v9  ;;  %v1297_v9 = vld [vmem:[%s3460_s8 + $0x38] sm:$0xff] }
 0x244   : > { %1082 = vmatpush.msra.mxu3 %v1857_v11  ;;  %v1295_v11 = vld [vmem:[%s3460_s8 + $0x28] sm:$0xff] }
 0x246   : > { %1083 = vmatpush.msra.mxu3 %v1856_v13  ;;  %v1293_v13 = vld [vmem:[%s3460_s8 + $0x18] sm:$0xff] }
 0x248   : > { %1084 = vmatpush.msra.mxu3 %v1855_v16  ;;  %v1290_v16 = vld [vmem:[%s3460_s8] sm:$0xff] }
 0x24a   : > { %1306 = vmatpush.msrb.mxu3 %v1305_v59  ;;  %v1948_v59 = vld [vmem:[%s3462_s10 + $0x130] sm:$0xff] }
 0x24c   : > { %1307 = vmatpush.msrb.mxu3 %v1304_v60  ;;  %v1357_v60 = vld [vmem:[%s3462_s10 + $0x30] sm:$0xff] }
 0x29c   : > { %v863_v57 = vpop.f32.mrf.mxu3 }
 0x29d   : > { %960 = vmatmul.f32.vlgmr.msra.gmra.mxu1 %v863_v57  ;;  %v1910_v57 = vld [vmem:[%s3458_s6 + $0x308] sm:$0xff] }
 0x2a4   : > { %v904_v1 = vpop.f32.mrf.mxu3 }
 0x2a5   : > { %940 = vmatmul.f32.vlgmr.msra.gmra.mxu0 %v904_v1 }
 0x2a6   : > { %1107 = vmatpush.msra.mxu0 %v2696_v36 }
 0x2a8   : > { %1108 = vmatpush.msra.mxu0 %v2682_v30 }
 0x2aa   : > { %1109 = vmatpush.msra.mxu0 %v2674_v27 }
 0x2ac   : > { %1110 = vmatpush.msra.mxu0 %v2672_v26  ;;  %v1049_v15 = vpop.f32.mrf.mxu3 }
 0x2ad   : > { %1836 = vmatmul.msk.f32.vlgmr.msrb.gmra.mxu0 %vm800_vm5, %v1835_v3  ;;  %1085 = vmatmul.f32.vlgmr.msra.gmra.mxu3 %v1049_v15  ;;  %v1303_v3 = vld [vmem:[%s3460_s8 + $0x68] sm:$0xff] }
 0x2ae   : > { %1195 = vmatpush.msrb.mxu0 %v1906_v22  ;;  %1308 = vmatpush.msrb.mxu3 %v1303_v3  ;;  %v1291_v15 = vld [vmem:[%s3460_s8 + $0x8] sm:$0xff]  ;;  %v1962_v3 = vld [vmem:[%s3462_s10 + $0x1a0] sm:$0xff] }
 0x2b0   : > { %1196 = vmatpush.msrb.mxu0 %v1905_v23  ;;  %v2081_v23 = vld [vmem:[%s3459_s7] ss:$0 sm:$0xff] }
 0x2b2   : > { %1197 = vmatpush.msrb.mxu0 %v1904_v24 }
 0x2b4   : > { %1198 = vmatpush.msrb.mxu0 %v1903_v25 }
 0x2b5   : > { %1872 = vmatmul.msk.f32.vlgmr.msra.gmra.mxu0 %vm800_vm5, %v1871_v4  ;;  %v1302_v4 = vld [vmem:[%s3460_s8 + $0x60] sm:$0xff] }
 0x2b6   : > { %1199 = vmatpush.msrb.mxu0 %v1902_v28  ;;  %1309 = vmatpush.msrb.mxu3 %v1302_v4  ;;  %v1945_v4 = vld [vmem:[%s3462_s10 + $0x118] sm:$0xff] }
 0x2b8   : > { %1200 = vmatpush.msrb.mxu0 %v1901_v31  ;;  %1310 = vmatpush.msrb.mxu3 %v1301_v5  ;;  %v1354_v5 = vld [vmem:[%s3462_s10 + $0x18] sm:$0xff] }
 0x2ba   : > { %1201 = vmatpush.msrb.mxu0 %v1900_v32  ;;  %1311 = vmatpush.msrb.mxu3 %v1300_v6  ;;  %v1961_v6 = vld [vmem:[%s3462_s10 + $0x198] sm:$0xff] }
 0x2bc   : > { %1202 = vmatpush.msrb.mxu0 %v1899_v33  ;;  %1312 = vmatpush.msrb.mxu3 %v1299_v7  ;;  %v1944_v7 = vld [vmem:[%s3462_s10 + $0x110] sm:$0xff] }
 0x2be   : > { %1203 = vmatpush.msrb.mxu0 %v1898_v34  ;;  %1313 = vmatpush.msrb.mxu3 %v1298_v8  ;;  %v1353_v8 = vld [vmem:[%s3462_s10 + $0x10] sm:$0xff] }
 0x2c0   : > { %1204 = vmatpush.msrb.mxu0 %v1897_v35  ;;  %1314 = vmatpush.msrb.mxu3 %v1297_v9  ;;  %v1366_v35 = vld [vmem:[%s3462_s10 + $0x78] sm:$0xff]  ;;  %v1960_v9 = vld [vmem:[%s3462_s10 + $0x190] sm:$0xff] }
 0x2c2   : > { %1205 = vmatpush.msrb.mxu0 %v1896_v38  ;;  %1315 = vmatpush.msrb.mxu3 %v1296_v10  ;;  %v1956_v38 = vld [vmem:[%s3462_s10 + $0x170] sm:$0xff]  ;;  %v1943_v10 = vld [vmem:[%s3462_s10 + $0x108] sm:$0xff] }
 0x2c4   : > { %1206 = vmatpush.msrb.mxu0 %v1895_v45  ;;  %1316 = vmatpush.msrb.mxu3 %v1295_v11  ;;  %v1362_v45 = vld [vmem:[%s3462_s10 + $0x58] sm:$0xff]  ;;  %v1352_v11 = vld [vmem:[%s3462_s10 + $0x8] sm:$0xff] }
 0x2c6   : > { %1207 = vmatpush.msrb.mxu0 %v1894_v47  ;;  %1317 = vmatpush.msrb.mxu3 %v1294_v12  ;;  %v1952_v47 = vld [vmem:[%s3462_s10 + $0x150] sm:$0xff]  ;;  %v1959_v12 = vld [vmem:[%s3462_s10 + $0x188] sm:$0xff] }
 0x2c8   : > { %1208 = vmatpush.msrb.mxu0 %v1893_v49  ;;  %1318 = vmatpush.msrb.mxu3 %v1293_v13  ;;  %v1968_v49 = vld [vmem:[%s3462_s10 + $0x1d0] sm:$0xff]  ;;  %v1942_v13 = vld [vmem:[%s3462_s10 + $0x100] sm:$0xff] }
 0x2ca   : > { %1209 = vmatpush.msrb.mxu0 %v1892_v51  ;;  %1319 = vmatpush.msrb.mxu3 %v1292_v14  ;;  %v1360_v51 = vld [vmem:[%s3462_s10 + $0x48] sm:$0xff]  ;;  %v1289_v14 = vld [vmem:[%s3461_s9] sm:$0xff] }
 0x2cc   : > { %1210 = vmatpush.msrb.mxu0 %v1891_v53  ;;  %1320 = vmatpush.msrb.mxu3 %v1291_v15  ;;  %v1950_v53 = vld [vmem:[%s3462_s10 + $0x140] sm:$0xff]  ;;  %v2021_v15 = vld [vmem:[%s3462_s10 + $0x378] sm:$0xff] }
 0x2ce   : > { %1321 = vmatpush.msrb.mxu3 %v1290_v16  ;;  %1367 = vmatpush.msra.mxu0 %v1366_v35  ;;  %v1937_v35 = vld [vmem:[%s3462_s10 + $0xd8] sm:$0xff] }
 0x31a   : > { %v961_v61 = vpop.f32.mrf.mxu1 }
 0x322   : > { %v2883_v29 = vpop.f32.mrf.mxu0 }
 0x323   : > { %v962_v62 = vadd.f32 %v961_v61, %v2883_v29  ;;  %v1964_v61 = vld [vmem:[%s3462_s10 + $0x1b0] sm:$0xff] }
 0x32a   : > { %v986_v37 = vpop.f32.mrf.mxu0 }
 0x32b   : > { %1022 = vmatmul.f32.vlgmr.msra.gmra.mxu2 %v986_v37  ;;  %v1957_v37 = vld [vmem:[%s3462_s10 + $0x178] sm:$0xff] }
 0x32c   : > { %1233 = vmatpush.msra.mxu2 %v2696_v36 }
 0x32e   : > { %1234 = vmatpush.msra.mxu2 %v2682_v30  ;;  %v1923_v30 = vld [vmem:[%s3458_s6 + $0x370] sm:$0xff] }
 0x330   : > { %1235 = vmatpush.msra.mxu2 %v2674_v27  ;;  %v1922_v27 = vld [vmem:[%s3458_s6 + $0x368] sm:$0xff]  ;;  %v1086_v17 = vpop.f32.mrf.mxu3 }
 0x332   : > { %1236 = vmatpush.msra.mxu2 %v2672_v26  ;;  %v1112_v36 = vpop.f32.mrf.mxu0  ;;  %v1907_v26 = vld [vmem:[%s3457_s5 + $0x30] sm:$0xff] }
 0x333   : > { %1890 = vmatmul.msk.f32.vlgmr.msrb.gmra.mxu2 %vm800_vm5, %v1889_v39  ;;  %1148 = vmatmul.f32.vlgmr.msrb.gmra.mxu1 %v1112_v36  ;;  %v1973_v39 = vld [vmem:[%s3462_s10 + $0x1f8] sm:$0xff]  ;;  %v1955_v36 = vld [vmem:[%s3462_s10 + $0x168] sm:$0xff] }
 0x334   : > { %1258 = vmatpush.msrb.mxu2 %v1924_v40  ;;  %v1365_v40 = vld [vmem:[%s3462_s10 + $0x70] sm:$0xff]  ;;  %1488 = vmatpush.msra.mxu3 %v1973_v39  ;;  %v2034_v39 = vld [vmem:[%s3462_s10 + $0x3e0] sm:$0xff] }
 0x335   : > { %1368 = vmatpush.msra.mxu0 %v1365_v40  ;;  %v1985_v40 = vld [vmem:[%s3462_s10 + $0x258] sm:$0xff] }
 0x336   : > { %1259 = vmatpush.msrb.mxu2 %v1923_v30  ;;  %v1972_v30 = vld [vmem:[%s3462_s10 + $0x1f0] sm:$0xff] }
 0x337   : > { %1489 = vmatpush.msra.mxu3 %v1972_v30  ;;  %v2016_v30 = vld [vmem:[%s3462_s10 + $0x350] sm:$0xff] }
 0x338   : > { %1260 = vmatpush.msrb.mxu2 %v1922_v27  ;;  %v1364_v27 = vld [vmem:[%s3462_s10 + $0x68] sm:$0xff] }
 0x339   : > { %1369 = vmatpush.msra.mxu0 %v1364_v27  ;;  %v2033_v27 = vld [vmem:[%s3462_s10 + $0x3d8] sm:$0xff] }
 0x33a   : > { %1261 = vmatpush.msrb.mxu2 %v1921_v41  ;;  %v1971_v41 = vld [vmem:[%s3462_s10 + $0x1e8] sm:$0xff] }
 0x33b   : > { %1908 = vmatmul.msk.f32.vlgmr.msra.gmra.mxu2 %vm800_vm5, %v1907_v26  ;;  %v1954_v26 = vld [vmem:[%s3462_s10 + $0x160] sm:$0xff]  ;;  %1490 = vmatpush.msra.mxu3 %v1971_v41  ;;  %v1984_v41 = vld [vmem:[%s3462_s10 + $0x250] sm:$0xff] }
 0x33c   : > { %1262 = vmatpush.msrb.mxu2 %v1920_v42  ;;  %v1363_v42 = vld [vmem:[%s3462_s10 + $0x60] sm:$0xff] }
 0x33d   : > { %1370 = vmatpush.msra.mxu0 %v1363_v42  ;;  %v2015_v42 = vld [vmem:[%s3462_s10 + $0x348] sm:$0xff] }
 0x33e   : > { %1263 = vmatpush.msrb.mxu2 %v1919_v43  ;;  %v1970_v43 = vld [vmem:[%s3462_s10 + $0x1e0] sm:$0xff] }
 0x33f   : > { %1491 = vmatpush.msra.mxu3 %v1970_v43  ;;  %1371 = vmatpush.msra.mxu0 %v1362_v45  ;;  %v2032_v43 = vld [vmem:[%s3462_s10 + $0x3d0] sm:$0xff]  ;;  %v1934_v45 = vld [vmem:[%s3462_s10 + $0xc0] sm:$0xff] }
 0x340   : > { %1264 = vmatpush.msrb.mxu2 %v1918_v44  ;;  %v1953_v44 = vld [vmem:[%s3462_s10 + $0x158] sm:$0xff] }
 0x342   : > { %1265 = vmatpush.msrb.mxu2 %v1917_v46  ;;  %v1969_v46 = vld [vmem:[%s3462_s10 + $0x1d8] sm:$0xff] }
 0x343   : > { %1492 = vmatpush.msra.mxu3 %v1969_v46  ;;  %v2014_v46 = vld [vmem:[%s3462_s10 + $0x340] sm:$0xff] }
 0x344   : > { %1266 = vmatpush.msrb.mxu2 %v1916_v48  ;;  %v1361_v48 = vld [vmem:[%s3462_s10 + $0x50] sm:$0xff] }
 0x345   : > { %1372 = vmatpush.msra.mxu0 %v1361_v48  ;;  %1493 = vmatpush.msra.mxu3 %v1968_v49  ;;  %v1982_v48 = vld [vmem:[%s3462_s10 + $0x240] sm:$0xff]  ;;  %v1933_v49 = vld [vmem:[%s3462_s10 + $0xb8] sm:$0xff] }
 0x346   : > { %1267 = vmatpush.msrb.mxu2 %v1915_v50  ;;  %v1951_v50 = vld [vmem:[%s3462_s10 + $0x148] sm:$0xff] }
 0x347   : > { %1373 = vmatpush.msra.mxu0 %v1360_v51  ;;  %v2030_v51 = vld [vmem:[%s3462_s10 + $0x3c0] sm:$0xff] }
 0x348   : > { %1268 = vmatpush.msrb.mxu2 %v1914_v52  ;;  %v1967_v52 = vld [vmem:[%s3462_s10 + $0x1c8] sm:$0xff] }
 0x349   : > { %1494 = vmatpush.msra.mxu3 %v1967_v52  ;;  %v1981_v52 = vld [vmem:[%s3462_s10 + $0x238] sm:$0xff] }
 0x34a   : > { %1269 = vmatpush.msrb.mxu2 %v1913_v54  ;;  %v1359_v54 = vld [vmem:[%s3462_s10 + $0x40] sm:$0xff] }
 0x34b   : > { %1374 = vmatpush.msra.mxu0 %v1359_v54  ;;  %v2012_v54 = vld [vmem:[%s3462_s10 + $0x330] sm:$0xff] }
 0x34c   : > { %1270 = vmatpush.msrb.mxu2 %v1912_v55  ;;  %v1966_v55 = vld [vmem:[%s3462_s10 + $0x1c0] sm:$0xff] }
 0x34d   : > { %1495 = vmatpush.msra.mxu3 %v1966_v55  ;;  %v2029_v55 = vld [vmem:[%s3462_s10 + $0x3b8] sm:$0xff] }
 0x34e   : > { %1271 = vmatpush.msrb.mxu2 %v1911_v56  ;;  %v1949_v56 = vld [vmem:[%s3462_s10 + $0x138] sm:$0xff] }
 0x350   : > { %1272 = vmatpush.msrb.mxu2 %v1910_v57  ;;  %v1358_v57 = vld [vmem:[%s3462_s10 + $0x38] sm:$0xff] }
 0x351   : > { %1375 = vmatpush.msra.mxu0 %v1358_v57  ;;  %v1930_v57 = vld [vmem:[%s3462_s10 + $0xa0] sm:$0xff] }
 0x352   : > { %1273 = vmatpush.msrb.mxu2 %v1909_v58  ;;  %v1965_v58 = vld [vmem:[%s3462_s10 + $0x1b8] sm:$0xff] }
 0x353   : > { %1496 = vmatpush.msra.mxu3 %v1965_v58  ;;  %1376 = vmatpush.msra.mxu0 %v1357_v60  ;;  %v1929_v58 = vld [vmem:[%s3462_s10 + $0x98] sm:$0xff]  ;;  %v1927_v60 = vld [vmem:[%s3462_s10 + $0x88] sm:$0xff] }
 0x354   : > { %1448 = vmatpush.msra.mxu2 %v1957_v37  ;;  %v1986_v37 = vld [vmem:[%s3462_s10 + $0x260] sm:$0xff] }
 0x355   : > { %1497 = vmatpush.msra.mxu3 %v1964_v61  ;;  %v1926_v61 = vld [vmem:[%s3462_s10 + $0x80] sm:$0xff] }
 0x356   : > { %1449 = vmatpush.msra.mxu2 %v1956_v38  ;;  %v2017_v38 = vld [vmem:[%s3462_s10 + $0x358] sm:$0xff] }
 0x358   : > { %1450 = vmatpush.msra.mxu2 %v1955_v36  ;;  %v1936_v36 = vld [vmem:[%s3462_s10 + $0xd0] sm:$0xff] }
 0x35a   : > { %1451 = vmatpush.msra.mxu2 %v1954_v26  ;;  %v1935_v26 = vld [vmem:[%s3462_s10 + $0xc8] sm:$0xff] }
 0x35c   : > { %1452 = vmatpush.msra.mxu2 %v1953_v44  ;;  %v1983_v44 = vld [vmem:[%s3462_s10 + $0x248] sm:$0xff] }
 0x35e   : > { %1453 = vmatpush.msra.mxu2 %v1952_v47  ;;  %v2031_v47 = vld [vmem:[%s3462_s10 + $0x3c8] sm:$0xff] }
 0x360   : > { %1454 = vmatpush.msra.mxu2 %v1951_v50  ;;  %v2013_v50 = vld [vmem:[%s3462_s10 + $0x338] sm:$0xff] }
 0x362   : > { %1455 = vmatpush.msra.mxu2 %v1950_v53  ;;  %v1932_v53 = vld [vmem:[%s3462_s10 + $0xb0] sm:$0xff] }
 0x364   : > { %1456 = vmatpush.msra.mxu2 %v1949_v56  ;;  %v1931_v56 = vld [vmem:[%s3462_s10 + $0xa8] sm:$0xff] }
 0x366   : > { %1457 = vmatpush.msra.mxu2 %v1948_v59  ;;  %v1928_v59 = vld [vmem:[%s3462_s10 + $0x90] sm:$0xff] }
 0x3ae   : > { %v1023_v63 = vpop.f32.mrf.mxu2 }
 0x3af   : > { %v1026_v0 = vadd.f32 %v1023_v63, %v962_v62  ;;  %v1947_v62 = vld [vmem:[%s3462_s10 + $0x128] sm:$0xff] }
 0x3b0   : > { %v1149_v19 = vpop.f32.mrf.mxu1  ;;  %v1356_v63 = vld [vmem:[%s3462_s10 + $0x28] sm:$0xff]  ;;  %1458 = vmatpush.msra.mxu2 %v1947_v62  ;;  %v2005_v62 = vld [vmem:[%s3462_s10 + $0x2f8] sm:$0xff] }
 0x3b1   : > { %v1089_v18 = vadd.f32 %v1086_v17, %v1026_v0  ;;  %v1963_v0 = vld [vmem:[%s3462_s10 + $0x1a8] sm:$0xff]  ;;  %1377 = vmatpush.msra.mxu0 %v1356_v63  ;;  %v1941_v17 = vld [vmem:[%s3462_s10 + $0xf8] sm:$0xff]  ;;  %v2004_v63 = vld [vmem:[%s3462_s10 + $0x2f0] sm:$0xff] }
 0x3b2   : > { %1498 = vmatpush.msra.mxu3 %v1963_v0  ;;  %v2003_v0 = vld [vmem:[%s3462_s10 + $0x2e8] sm:$0xff] }
 0x3b3   : > { %v1152_v21 = vadd.f32 %v1149_v19, %v1089_v18  ;;  %v1351_v18 = vld [vmem:[%s3462_s10] sm:$0xff] }
 0x3b4   : > { %1499 = vmatpush.msra.mxu3 %v1962_v3  ;;  %v1958_v19 = vld [vmem:[%s3462_s10 + $0x180] sm:$0xff]  ;;  %v2000_v3 = vld [vmem:[%s3462_s10 + $0x2d0] sm:$0xff] }
 0x3b6   : > { %v1175_v1 = vpop.f32.mrf.mxu2  ;;  %1500 = vmatpush.msra.mxu3 %v1961_v6  ;;  %v1980_v6 = vld [vmem:[%s3462_s10 + $0x230] sm:$0xff] }
 0x3b7   : > { %1211 = vmatmul.f32.vlgmr.msrb.gmra.mxu0 %v1175_v1  ;;  %v1946_v1 = vld [vmem:[%s3462_s10 + $0x120] sm:$0xff] }
 0x3b8   : > { %1459 = vmatpush.msra.mxu2 %v1946_v1  ;;  %1501 = vmatpush.msra.mxu3 %v1960_v9  ;;  %v2002_v1 = vld [vmem:[%s3462_s10 + $0x2e0] sm:$0xff]  ;;  %v1979_v9 = vld [vmem:[%s3462_s10 + $0x228] sm:$0xff] }
 0x3ba   : > { %1460 = vmatpush.msra.mxu2 %v1945_v4  ;;  %1502 = vmatpush.msra.mxu3 %v1959_v12  ;;  %v1999_v4 = vld [vmem:[%s3462_s10 + $0x2c8] sm:$0xff]  ;;  %v2010_v12 = vld [vmem:[%s3462_s10 + $0x320] sm:$0xff] }
 0x3bc   : > { %1461 = vmatpush.msra.mxu2 %v1944_v7  ;;  %1503 = vmatpush.msra.mxu3 %v1958_v19  ;;  %v1997_v7 = vld [vmem:[%s3462_s10 + $0x2b8] sm:$0xff] }
 0x3bd   : > { %v2009_v19 = vld [vmem:[%s3462_s10 + $0x318] sm:$0xff] }
 0x3be   : > { %v1238_v2 = vpop.f32.mrf.mxu2  ;;  %1462 = vmatpush.msra.mxu2 %v1943_v10  ;;  %v1996_v10 = vld [vmem:[%s3462_s10 + $0x2b0] sm:$0xff] }
 0x3bf   : > { %1274 = vmatmul.f32.vlgmr.msrb.gmra.mxu2 %v1238_v2  ;;  %v1355_v2 = vld [vmem:[%s3462_s10 + $0x20] sm:$0xff] }
 0x3c0   : > { %1378 = vmatpush.msra.mxu0 %v1355_v2  ;;  %1463 = vmatpush.msra.mxu2 %v1942_v13  ;;  %v2001_v2 = vld [vmem:[%s3462_s10 + $0x2d8] sm:$0xff]  ;;  %v2027_v13 = vld [vmem:[%s3462_s10 + $0x3a8] sm:$0xff] }
 0x3c2   : > { %1379 = vmatpush.msra.mxu0 %v1354_v5  ;;  %1608 = vmatpush.msrb.mxu2 %v2021_v15  ;;  %v1998_v5 = vld [vmem:[%s3462_s10 + $0x2c0] sm:$0xff]  ;;  %v1995_v15 = vld [vmem:[%s3462_s10 + $0x2a8] sm:$0xff] }
 0x3c4   : > { %1380 = vmatpush.msra.mxu0 %v1353_v8  ;;  %v2028_v8 = vld [vmem:[%s3462_s10 + $0x3b0] sm:$0xff] }
 0x3c6   : > { %1381 = vmatpush.msra.mxu0 %v1352_v11  ;;  %v2011_v11 = vld [vmem:[%s3462_s10 + $0x328] sm:$0xff] }
 0x3c8   : > { %1382 = vmatpush.msra.mxu0 %v1351_v18  ;;  %v1994_v18 = vld [vmem:[%s3462_s10 + $0x2a0] sm:$0xff] }
 0x434   : > { %v1212_v20 = vpop.f32.mrf.mxu0 }
 0x435   : > { %v1215_v22 = vadd.f32 %v1212_v20, %v1152_v21  ;;  %v1989_v20 = vld [vmem:[%s3462_s10 + $0x278] sm:$0xff]  ;;  %v1940_v21 = vld [vmem:[%s3462_s10 + $0xf0] sm:$0xff] }
 0x436   : > { %1528 = vmatpush.msrb.mxu0 %v1989_v20  ;;  %v2025_v20 = vld [vmem:[%s3462_s10 + $0x398] sm:$0xff] }
 0x442   : > { %v1275_v24 = vpop.f32.mrf.mxu2 }
 0x443   : > { %v1278_v25 = vadd.f32 %v1275_v24, %v1215_v22  ;;  %v2020_v22 = vld [vmem:[%s3462_s10 + $0x370] sm:$0xff] }
 0x444   : > { %v1988_v24 = vld [vmem:[%s3462_s10 + $0x270] sm:$0xff]  ;;  %1609 = vmatpush.msrb.mxu2 %v2020_v22 }
 0x445   : > { %v1283_v28 = vadd.f32 %v2081_v23, %v1278_v25  ;;  %v2037_v23 = vld [vmem:[%s3462_s10 + $0x3f8] sm:$0xff]  ;;  %v1939_v25 = vld [vmem:[%s3462_s10 + $0xe8] sm:$0xff]  ;;  %1529 = vmatpush.msrb.mxu0 %v1988_v24  ;;  %v1976_v22 = vld [vmem:[%s3462_s10 + $0x210] sm:$0xff] }
 0x446   : > { %v2024_v24 = vld [vmem:[%s3462_s10 + $0x390] sm:$0xff] }
 0x447   : > { %v1284_v29 = vmul.f32 0.117071, %v1283_v28  ;;  %v1286_v32 = vmul.f32 0.5, %v1283_v28 }
 0x449   : > { %v1285_v31 = vmul.f32 %v1284_v29, %v1283_v28  ;;  %v2019_v28 = vld [vmem:[%s3462_s10 + $0x368] sm:$0xff]  ;;  %v2036_v29 = vld [vmem:[%s3462_s10 + $0x3f0] sm:$0xff] }
 0x44a   : > { %1610 = vmatpush.msrb.mxu2 %v2019_v28  ;;  %v1992_v28 = vld [vmem:[%s3462_s10 + $0x290] sm:$0xff] }
 0x44b   : > { %v1287_v33 = vadd.f32 %v1286_v32, %v1285_v31  ;;  %v1987_v31 = vld [vmem:[%s3462_s10 + $0x268] sm:$0xff]  ;;  %v1938_v32 = vld [vmem:[%s3462_s10 + $0xe0] sm:$0xff] }
 0x44c   : > { %1530 = vmatpush.msrb.mxu0 %v1987_v31  ;;  %v2023_v31 = vld [vmem:[%s3462_s10 + $0x388] sm:$0xff] }
 0x44d   : > { %v1288_v34 = vadd.f32 0.375373, %v1287_v33  ;;  %v2018_v33 = vld [vmem:[%s3462_s10 + $0x360] sm:$0xff] }
 0x44e   : > { %1611 = vmatpush.msrb.mxu2 %v2018_v33  ;;  %1531 = vmatpush.msrb.mxu0 %v1986_v37  ;;  %v1974_v33 = vld [vmem:[%s3462_s10 + $0x200] sm:$0xff] }
 0x44f   : > { %1322 = vmatmul.f32.vlgmr.msrb.gmra.mxu3 %v1288_v34  ;;  %v2035_v34 = vld [vmem:[%s3462_s10 + $0x3e8] sm:$0xff]  ;;  %v2022_v37 = vld [vmem:[%s3462_s10 + $0x380] sm:$0xff] }
 0x450   : > { %1648 = vmatpush.msrb.mxu3 %v2037_v23  ;;  %1612 = vmatpush.msrb.mxu2 %v2017_v38  ;;  %v1993_v23 = vld [vmem:[%s3462_s10 + $0x298] sm:$0xff] }
 0x451   : > { %1532 = vmatpush.msrb.mxu0 %v1985_v40 }
 0x452   : > { %1649 = vmatpush.msrb.mxu3 %v2036_v29  ;;  %1613 = vmatpush.msrb.mxu2 %v2016_v30  ;;  %v2007_v29 = vld [vmem:[%s3462_s10 + $0x308] sm:$0xff] }
 0x453   : > { %1533 = vmatpush.msrb.mxu0 %v1984_v41 }
 0x454   : > { %1650 = vmatpush.msrb.mxu3 %v2035_v34  ;;  %1614 = vmatpush.msrb.mxu2 %v2015_v42  ;;  %v1991_v34 = vld [vmem:[%s3462_s10 + $0x288] sm:$0xff]  ;;  %v1350_v42 = vld [vmem:[%s3463_s11] sm:$0x1] }
 0x455   : > { %1534 = vmatpush.msrb.mxu0 %v1983_v44 }
 0x456   : > { %1651 = vmatpush.msrb.mxu3 %v2034_v39  ;;  %1615 = vmatpush.msrb.mxu2 %v2014_v46 }
 0x457   : > { %1535 = vmatpush.msrb.mxu0 %v1982_v48 }
 0x458   : > { %1652 = vmatpush.msrb.mxu3 %v2033_v27  ;;  %1616 = vmatpush.msrb.mxu2 %v2013_v50 }
 0x459   : > { %1536 = vmatpush.msrb.mxu0 %v1981_v52 }
 0x45a   : > { %1653 = vmatpush.msrb.mxu3 %v2032_v43  ;;  %1617 = vmatpush.msrb.mxu2 %v2012_v54 }
 0x45b   : > { %1537 = vmatpush.msrb.mxu0 %v1980_v6 }
 0x45c   : > { %1654 = vmatpush.msrb.mxu3 %v2031_v47  ;;  %1618 = vmatpush.msrb.mxu2 %v2011_v11 }
 0x45d   : > { %1538 = vmatpush.msrb.mxu0 %v1979_v9 }
 0x45e   : > { %1655 = vmatpush.msrb.mxu3 %v2030_v51  ;;  %1619 = vmatpush.msrb.mxu2 %v2010_v12 }
 0x460   : > { %1656 = vmatpush.msrb.mxu3 %v2029_v55  ;;  %1620 = vmatpush.msrb.mxu2 %v2009_v19 }
 0x462   : > { %1657 = vmatpush.msrb.mxu3 %v2028_v8 }
 0x464   : > { %1658 = vmatpush.msrb.mxu3 %v2027_v13 }
 0x4d2   : > { %v1323_v16 = vpop.f32.mrf.mxu3 }
 0x4d3   : > { %1345 = vmatpush.msra.mxu1 %v1323_v16  ;;  %v2026_v16 = vld [vmem:[%s3462_s10 + $0x3a0] sm:$0xff] }
 0x4d4   : > { %1925 = vmatmul.msk.f32.vlgmr.msra.gmra.mxu1 %vm1326_vm6, %v1289_v14  ;;  %v1978_v14 = vld [vmem:[%s3462_s10 + $0x220] sm:$0xff]  ;;  %1659 = vmatpush.msrb.mxu3 %v2026_v16 }
 0x4d5   : > { %1408 = vmatpush.msrb.mxu1 %v1941_v17  ;;  %1539 = vmatpush.msrb.mxu0 %v1978_v14  ;;  %v1977_v17 = vld [vmem:[%s3462_s10 + $0x218] sm:$0xff] }
 0x4d6   : > { %1660 = vmatpush.msrb.mxu3 %v2025_v20 }
 0x4d7   : > { %1409 = vmatpush.msrb.mxu1 %v1940_v21  ;;  %1540 = vmatpush.msrb.mxu0 %v1977_v17  ;;  %v2008_v21 = vld [vmem:[%s3462_s10 + $0x310] sm:$0xff] }
 0x4d8   : > { %1621 = vmatpush.msrb.mxu2 %v2008_v21  ;;  %1661 = vmatpush.msrb.mxu3 %v2024_v24 }
 0x4d9   : > { %1410 = vmatpush.msrb.mxu1 %v1939_v25  ;;  %v1975_v25 = vld [vmem:[%s3462_s10 + $0x208] sm:$0xff]  ;;  %1541 = vmatpush.msrb.mxu0 %v1976_v22 }
 0x4da   : > { %1622 = vmatpush.msrb.mxu2 %v2007_v29  ;;  %1662 = vmatpush.msrb.mxu3 %v2023_v31 }
 0x4db   : > { %1411 = vmatpush.msrb.mxu1 %v1938_v32  ;;  %1542 = vmatpush.msrb.mxu0 %v1975_v25  ;;  %v2006_v32 = vld [vmem:[%s3462_s10 + $0x300] sm:$0xff] }
 0x4dc   : > { %1623 = vmatpush.msrb.mxu2 %v2006_v32  ;;  %1663 = vmatpush.msrb.mxu3 %v2022_v37 }
 0x4dd   : > { %1412 = vmatpush.msrb.mxu1 %v1937_v35  ;;  %1543 = vmatpush.msrb.mxu0 %v1974_v33  ;;  %v1990_v35 = vld [vmem:[%s3462_s10 + $0x280] sm:$0xff] }
 0x4df   : > { %1413 = vmatpush.msrb.mxu1 %v1936_v36 }
 0x4e1   : > { %1414 = vmatpush.msrb.mxu1 %v1935_v26 }
 0x4e3   : > { %1415 = vmatpush.msrb.mxu1 %v1934_v45 }
 0x4e5   : > { %1416 = vmatpush.msrb.mxu1 %v1933_v49 }
 0x4e7   : > { %1417 = vmatpush.msrb.mxu1 %v1932_v53 }
 0x4e9   : > { %1418 = vmatpush.msrb.mxu1 %v1931_v56 }
 0x4eb   : > { %1419 = vmatpush.msrb.mxu1 %v1930_v57 }
 0x4ed   : > { %1420 = vmatpush.msrb.mxu1 %v1929_v58 }
 0x4ef   : > { %1421 = vmatpush.msrb.mxu1 %v1928_v59 }
 0x4f1   : > { %1422 = vmatpush.msrb.mxu1 %v1927_v60 }
 0x4f3   : > { %1423 = vmatpush.msrb.mxu1 %v1926_v61 }
 0x4f5   : > { %1568 = vmatpush.msra.mxu1 %v2005_v62 }
 0x4f7   : > { %1569 = vmatpush.msra.mxu1 %v2004_v63 }
 0x4f9   : > { %1570 = vmatpush.msra.mxu1 %v2003_v0 }
 0x4fb   : > { %1571 = vmatpush.msra.mxu1 %v2002_v1 }
 0x4fd   : > { %1572 = vmatpush.msra.mxu1 %v2001_v2 }
 0x4ff   : > { %1573 = vmatpush.msra.mxu1 %v2000_v3 }
 0x501   : > { %1574 = vmatpush.msra.mxu1 %v1999_v4 }
 0x503   : > { %1575 = vmatpush.msra.mxu1 %v1998_v5 }
 0x505   : > { %1576 = vmatpush.msra.mxu1 %v1997_v7 }
 0x507   : > { %1577 = vmatpush.msra.mxu1 %v1996_v10 }
 0x509   : > { %1578 = vmatpush.msra.mxu1 %v1995_v15 }
 0x50b   : > { %1579 = vmatpush.msra.mxu1 %v1994_v18 }
 0x50d   : > { %1580 = vmatpush.msra.mxu1 %v1993_v23 }
 0x50f   : > { %1581 = vmatpush.msra.mxu1 %v1992_v28 }
 0x511   : > { %1582 = vmatpush.msra.mxu1 %v1991_v34 }
 0x513   : > { %1583 = vmatpush.msra.mxu1 %v1990_v35 }
 0x551   : > { %v1347_v38 = vpop.f32.mrf.mxu1 }
 0x552   : > { %v1446_v39 = vrot.slane %v1347_v38, 2  ;;  %1383 = vmatmul.f32.vlgmr.msra.gmra.mxu0 %v1347_v38  ;;  %v1486_v40 = vrot.slane %v1347_v38, 3  ;;  %v1406_v36 = vrot.slane %v1347_v38, 1  ;;  %v1526_v30 = vrot.slane %v1347_v38, 4 }
 0x553   : > { %v1606_v27 = vrot.slane %v1347_v38, 6  ;;  %v1646_v41 = vrot.slane %v1347_v38, 7  ;;  %v1566_v26 = vrot.slane %v1347_v38, 5 }
 0x554   : > { %1464 = vmatmul.f32.vlgmr.msra.gmra.mxu2 %v1446_v39  ;;  %1504 = vmatmul.f32.vlgmr.msra.gmra.mxu3 %v1486_v40 }
 0x555   : > { %1424 = vmatmul.f32.vlgmr.msrb.gmra.mxu1 %v1406_v36 }
 0x55a   : > { %1544 = vmatmul.f32.vlgmr.msrb.gmra.mxu0 %v1526_v30 }
 0x55c   : > { %1624 = vmatmul.f32.vlgmr.msrb.gmra.mxu2 %v1606_v27  ;;  %1664 = vmatmul.f32.vlgmr.msrb.gmra.mxu3 %v1646_v41 }
 0x55d   : > { %1584 = vmatmul.f32.vlgmr.msra.gmra.mxu1 %v1566_v26 }
 0x5cf   : > { %v1384_v43 = vpop.f32.mrf.mxu0 }
 0x5d0   : > { %v1387_v44 = vadd.f32 %v1384_v43, %v1350_v42 }
 0x5d2   : > { %v1425_v45 = vpop.f32.mrf.mxu1 }
 0x5d3   : > { %v1428_v46 = vadd.f32 %v1425_v45, %v1387_v44 }
 0x5d7   : > { %v1465_v47 = vpop.f32.mrf.mxu2  ;;  %v1505_v48 = vpop.f32.mrf.mxu3 }
 0x5d8   : > { %v1468_v49 = vadd.f32 %v1465_v47, %v1428_v46  ;;  %v1545_v51 = vpop.f32.mrf.mxu0 }
 0x5da   : > { %v1508_v50 = vadd.f32 %v1505_v48, %v1468_v49  ;;  %v1585_v53 = vpop.f32.mrf.mxu1 }
 0x5dc   : > { %v1548_v52 = vadd.f32 %v1545_v51, %v1508_v50 }
 0x5de   : > { %v1588_v54 = vadd.f32 %v1585_v53, %v1548_v52 }
 0x5df   : > { %v1625_v55 = vpop.f32.mrf.mxu2  ;;  %v1665_v57 = vpop.f32.mrf.mxu3 }
 0x5e0   : > { %v1628_v56 = vadd.f32 %v1625_v55, %v1588_v54 }
 0x5e2   : > { %v1668_v58 = vadd.f32 %v1665_v57, %v1628_v56 }
 0x5e4   : > { %1670 = vst.msk [vmem:[%s405_s15] sm:$0x1] %vm1669_vm7, %v1668_v58 }
 0x5e5   : > { %2109 = shalt.err (!%p2106_p3)
}
 0x5e6   : > { %2041 = dma.vmem_to_hbm [thread:$0]  (%p2249_p5), %s1683_s16, 16, %s1685_s17, %s1672_s26  }
 0x5e7 PF: > { %p2047_p4 = scmp.ge.s32.totalorder %s2144_s24, 2  ;;  %s1696_s20 = sand.u32 1, %s2132_s21  }
 0x5e8   : > { %s1697_s29 = scalar_lea.sflag [#allocation3], %s1696_s20 }
 0x5e9   : > { %p2044_p7 = pnand %p2047_p4, %p2253_p6 }
 0x5eb   : > { %p2045_p8 = pneg %p2044_p7 }
 0x5ed   : > { %2127 = dma.done.wait (%p2045_p8), %s1697_s29, 16  }
 0x5ee   : > { %2129 = vsyncadd (%p2045_p8), %s1697_s29, 4294967280  ;;  %s3473_s24 = sld [smem:[#allocation6_spill]]  ;;  %s3476_s21 = smov %s2136_s22 }
 0x5ef   : > { %s3474_s15 = sld [smem:[#allocation5_spill]] }
 0x5f0   : > { %s3475_s23 = sld [smem:[#allocation7_spill]] }
 0x5f4   : > { %p22_p9 = scmp.ge.s32.totalorder %s3473_s24, 4  }
 0x5f5   : > { %s3477_s22 = smov %s3474_s15 }
 0x5f6   :  { %24 = sbr.rel (!%p22_p9) target bundleno = 3 (0x3), region = 126 }
 0x5fb   :  { %1702 = vsyncpa [#allocation3], 1 }
 0x5fc   :  { %1704 = vsyncpa [#allocation3 + $0x1], 1 }

</bundles_post_ra>
